<compile_context>
chip_gen: v7x
topology: tpu7x:2x2x1
jax: 0.10.0
libtpu: 0.0.40
codegen_flags: <defaults>
</compile_context>

<pallas_src>
import numpy as np

import jax
import jax.numpy as jnp
from jax import lax
from jax.experimental import pallas as pl
from jax.experimental.pallas import tpu as pltpu


def _round_up(x, m):
    return ((x + m - 1) // m) * m


def _build_taps(H, W, dilations):
    """Enumerate surviving (dy, dx) offsets and which (branch, ky, kx) taps map to each.

    A tap is pruned when |dy| >= H or |dx| >= W: with padding == dilation it only ever
    reads zero padding, so its contribution is exactly zero.
    """
    tap_order = []      # deterministic list of distinct (dy, dx)
    tap_members = {}    # (dy, dx) -> list of (branch, ky, kx)
    for bi, d in enumerate(dilations):
        for ky in range(3):
            for kx in range(3):
                dy, dx = (ky - 1) * d, (kx - 1) * d
                if abs(dy) >= H or abs(dx) >= W:
                    continue
                if (dy, dx) not in tap_members:
                    tap_members[(dy, dx)] = []
                    tap_order.append((dy, dx))
                tap_members[(dy, dx)].append((bi, ky, kx))
    return tap_order, tap_members


def _make_kernel(N, Cin, W, HW, L, Kp, P, tap_offsets, mask_row_of_tap, paired):
    """Kernel body with all static config closed over."""
    n_taps = len(tap_offsets)
    xrows = 2 * Cin if paired else Cin      # 8 when paired: channels duplicated

    def kernel(x_ref, w_ref, m_ref, o_ref, xpad_ref, col_ref):
        # x_ref   : (N, xrows, HW)   input (channel-duplicated when paired)
        # w_ref   : (Cout, Kp)       stacked pruned/merged weights + bias column
        # m_ref   : (n_masks, L)     combined per-tap validity masks, tiled over batch
        # o_ref   : (N, Cout, HW)    output
        # xpad_ref: (xrows, L + 2P)  VMEM scratch, lane-padded batch-folded input slab
        # col_ref : (Kp, L)          VMEM scratch, stacked im2col operand, L = N*HW

        # 1) Build the padded slab.  Only the two pad regions are zeroed (NaN-safety for
        #    the masked reads); the center is overwritten with aligned full-tile stores,
        #    one per batch slab (slab n lands at lane offset P + n*HW, a 128-multiple).
        if P > 0:
            xpad_ref[:, 0:P] = jnp.zeros((xrows, P), xpad_ref.dtype)
            xpad_ref[:, P + L:P + L + P] = jnp.zeros((xrows, P), xpad_ref.dtype)
        for n in range(N):
            xpad_ref[:, P + n * HW:P + (n + 1) * HW] = x_ref[n]

        def tap_value(t):
            dy, dx = tap_offsets[t]
            s = dy * W + dx                                   # static flat shift
            v = xpad_ref[:, P + s:P + s + L]                  # (xrows, L) shifted window
            mi = mask_row_of_tap[t]
            if mi is not None:                                # combined (dy, dx) validity
                v = v * m_ref[mi:mi + 1, :]                   # (1, L) sublane-broadcast
            return v

        # 2) Stacked im2col operand.
        if paired:
            # Two Cin=4 taps per (8, L) store -> every col write is a full unmasked
            # (8,128)-tile vst.  Rows 0..3 / 4..7 of the duplicated slab both hold the
            # input channels, so a sublane select places each tap in its half.
            top = lax.broadcasted_iota(jnp.int32, (8, L), 0) < Cin    # hoisted once
            for g in range(Kp // 8):
                ta, tb = 2 * g, 2 * g + 1
                if tb < n_taps:
                    blk = jnp.where(top, tap_value(ta), tap_value(tb))
                elif ta < n_taps:
                    blk = jnp.where(top, tap_value(ta), 1.0)  # bottom half: bias/pad rows
                else:
                    blk = jnp.ones((8, L), jnp.float32)       # bias/pad-only group
                col_ref[g * 8:(g + 1) * 8, :] = blk
        else:
            # Generic fallback (Cin != 4): per-tap stores (sublane-masked) + const tail.
            for t in range(n_taps):
                col_ref[t * Cin:(t + 1) * Cin, :] = tap_value(t)
            col_ref[n_taps * Cin:Kp, :] = jnp.ones((Kp - n_taps * Cin, L), jnp.float32)

        # 3) One fused MXU matmul over all branches/taps/channels for the whole batch.
        #    The summed bias rides the constant-1 row of col (no separate broadcast add).
        out = jnp.dot(w_ref[...], col_ref[...],
                      preferred_element_type=jnp.float32)      # (Cout, L)
        for n in range(N):                                     # 128-aligned lane slices
            o_ref[n] = out[:, n * HW:(n + 1) * HW].astype(o_ref.dtype)

    return kernel


def aspp_classifier_v2_forward(x_nchw, weights, biases, dilations, paddings=None,
                               size=None):
    """Pallas implementation of ASPP_Classifier_V2.forward(x, size=None).

    x_nchw : (N, Cin, H, W) float32
    weights: (num_branches, 3, 3, Cin, Cout) float32   (HWIO per tap)
    biases : (num_branches, Cout) float32
    """
    if size is not None:
        # TODO(synk): bilinear align_corners=True resize (size is not None) not implemented.
        raise NotImplementedError("size is not None path is not implemented")

    dilations = tuple(int(d) for d in dilations)
    if paddings is not None:
        assert tuple(int(p) for p in paddings) == dilations, \
            "tap pruning / edge masks assume padding == dilation"

    N, Cin, H, W = x_nchw.shape
    HW = H * W
    L = N * HW
    Cout = weights.shape[-1]
    n_branches = weights.shape[0]
    assert weights.shape == (n_branches, 3, 3, Cin, Cout)
    assert biases.shape == (n_branches, Cout)
    assert len(dilations) == n_branches

    tap_offsets, tap_members = _build_taps(H, W, dilations)
    n_taps = len(tap_offsets)
    Kp = _round_up(n_taps * Cin + 1, 8)          # +1 constant row for the folded bias

    # Stacked weight matrix (Cout, Kp); taps sharing an offset are pre-summed (exact),
    # the summed bias becomes an extra column against the constant-1 row of col.
    cols = []
    for (dy, dx) in tap_offsets:
        w_sum = None
        for (bi, ky, kx) in tap_members[(dy, dx)]:
            w_tap = weights[bi, ky, kx]                     # (Cin, Cout)
            w_sum = w_tap if w_sum is None else w_sum + w_tap
        cols.append(w_sum.T)                                # (Cout, Cin)
    parts = cols + [jnp.sum(biases, axis=0).reshape(Cout, 1)]
    if Kp > n_taps * Cin + 1:
        parts.append(jnp.zeros((Cout, Kp - n_taps * Cin - 1), jnp.float32))
    w_stk = jnp.concatenate(parts, axis=1).astype(jnp.float32)      # (Cout, Kp)

    # Combined (vertical + horizontal) validity masks: one row per tap that needs one,
    # tiled across the N batch slabs of the L = N*HW lane axis.
    hh = np.arange(HW, dtype=np.int64) // W
    ww = np.arange(HW, dtype=np.int64) % W
    mask_rows = []
    mask_row_of_tap = {}
    for t, (dy, dx) in enumerate(tap_offsets):
        m = ((hh + dy >= 0) & (hh + dy < H) & (ww + dx >= 0) & (ww + dx < W))
        if m.all():
            mask_row_of_tap[t] = None                       # center tap: no mask needed
        else:
            mask_row_of_tap[t] = len(mask_rows)
            mask_rows.append(np.tile(m.astype(np.float32), N))
    if not mask_rows:
        mask_rows.append(np.ones((L,), np.float32))         # dummy, never indexed
    masks = jnp.asarray(np.stack(mask_rows))                 # (n_masks, L)

    # Lane padding only as far as the largest surviving shift, rounded to a lane tile so
    # the pad / slab stores stay 128-aligned.  For 16x16 / dilations (6,12,18,24): 256.
    max_shift = max(abs(dy * W + dx) for (dy, dx) in tap_offsets)
    P = _round_up(max_shift, 128) if max_shift > 0 else 0

    paired = (2 * Cin == 8)                                  # Cin == 4: 2 taps per 8 rows
    x_flat = x_nchw.reshape(N, Cin, HW).astype(jnp.float32)  # free reshape, NCHW kept
    x_in = jnp.concatenate([x_flat, x_flat], axis=1) if paired else x_flat
    xrows = 2 * Cin if paired else Cin

    kernel = _make_kernel(N, Cin, W, HW, L, Kp, P, tap_offsets, mask_row_of_tap, paired)

    out_flat = pl.pallas_call(
        kernel,
        out_shape=jax.ShapeDtypeStruct((N, Cout, HW), jnp.float32),
        grid=(1,),                                           # whole batch in one step
        in_specs=[
            pl.BlockSpec((N, xrows, HW), lambda i: (0, 0, 0)),
            pl.BlockSpec((Cout, Kp), lambda i: (0, 0)),
            pl.BlockSpec(masks.shape, lambda i: (0, 0)),
        ],
        out_specs=pl.BlockSpec((N, Cout, HW), lambda i: (0, 0, 0)),
        scratch_shapes=[
            pltpu.VMEM((xrows, L + 2 * P), jnp.float32),     # lane-padded input slab
            pltpu.VMEM((Kp, L), jnp.float32),                # stacked im2col operand
        ],
    )(x_in, w_stk, masks)

    return out_flat.reshape(N, Cout, H, W)                   # free reshape back to NCHW


def _reference_forward(x_nchw, weights, biases, dilations):
    """Pure-JAX reference (lax dilated convs) for correctness checking."""
    out = None
    for bi, d in enumerate(dilations):
        y = lax.conv_general_dilated(
            x_nchw, weights[bi],
            window_strides=(1, 1),
            padding=[(d, d), (d, d)],
            rhs_dilation=(d, d),
            dimension_numbers=("NCHW", "HWIO", "NCHW"),
        ) + biases[bi][None, :, None, None]
        out = y if out is None else out + y
    return out


if __name__ == "__main__":
    # Module config (synthetic, deterministic init — no checkpoint loading).
    in_channels = 4
    num_classes = 5
    dilation_series = [6, 12, 18, 24]
    padding_series = [6, 12, 18, 24]   # padding == dilation, as in DeepLab ASPP-V2
    num_branches = len(dilation_series)

    N, H, W = 2, 16, 16

    key = jax.random.PRNGKey(0)
    k_x, k_w, k_b = jax.random.split(key, 3)

    # Input (the module receives a dict and reads x['out']).
    x = jax.random.normal(k_x, (N, in_channels, H, W), dtype=jnp.float32)
    x_dict = {"out": x}

    # Conv weights ~ N(0, 0.01) as in the module __init__; bias small uniform.
    weights = 0.01 * jax.random.normal(
        k_w, (num_branches, 3, 3, in_channels, num_classes), dtype=jnp.float32)
    biases = 0.1 * jax.random.uniform(
        k_b, (num_branches, num_classes), dtype=jnp.float32, minval=-1.0, maxval=1.0)

    out = aspp_classifier_v2_forward(
        x_dict["out"], weights, biases, dilation_series, padding_series)
    out = jax.block_until_ready(out)

    ref = _reference_forward(x_dict["out"], weights, biases, dilation_series)
    assert out.shape == (N, num_classes, H, W), out.shape
    max_err = float(jnp.max(jnp.abs(out - ref)))
    assert jnp.allclose(out, ref, atol=1e-5, rtol=1e-5), max_err

    print("KERNEL_OK")
</pallas_src>

<mosaic_0001>
module attributes {stable_mosaic.version = 11 : i64} {
  func.func @kernel(%arg0: i32, %arg1: memref<2x8x256xf32, #tpu.memory_space<vmem>>, %arg2: memref<5x72xf32, #tpu.memory_space<vmem>>, %arg3: memref<16x512xf32, #tpu.memory_space<vmem>>, %arg4: memref<2x5x256xf32, #tpu.memory_space<vmem>>, %arg5: memref<8x1024xf32, #tpu.memory_space<vmem>>, %arg6: memref<72x512xf32, #tpu.memory_space<vmem>>) attributes {dimension_semantics = [#tpu.dimension_semantics<arbitrary>], iteration_bounds = array<i64: 1>, scalar_prefetch = 0 : i64, scratch_operands = 2 : i64, tpu.core_type = #tpu.core_type<tc>, window_params = [{pipeline_mode = #tpu.pipeline_mode<synchronous>, transform_indices = @transform_0, window_bounds = array<i64: 2, 8, 256>}, {pipeline_mode = #tpu.pipeline_mode<synchronous>, transform_indices = @transform_1, window_bounds = array<i64: 5, 72>}, {pipeline_mode = #tpu.pipeline_mode<synchronous>, transform_indices = @transform_2, window_bounds = array<i64: 16, 512>}, {pipeline_mode = #tpu.pipeline_mode<synchronous>, transform_indices = @transform_3, window_bounds = array<i64: 2, 5, 256>}]} {
    %cst = arith.constant 0.000000e+00 : f32
    %0 = vector.broadcast %cst : f32 to vector<8x256xf32>
    %c0 = arith.constant 0 : index
    %c0_0 = arith.constant 0 : index
    %1 = vector.load %arg5[%c0, %c0_0] : memref<8x1024xf32, #tpu.memory_space<vmem>>, vector<8x256xf32>
    tpu.vector_store %arg5[%c0, %c0_0], %0 {strides = array<i32>} : memref<8x1024xf32, #tpu.memory_space<vmem>>, vector<8x256xf32>,
    %cst_1 = arith.constant 0.000000e+00 : f32
    %2 = vector.broadcast %cst_1 : f32 to vector<8x256xf32>
    %c0_2 = arith.constant 0 : index
    %c768 = arith.constant 768 : index
    %3 = vector.load %arg5[%c0_2, %c768] : memref<8x1024xf32, #tpu.memory_space<vmem>>, vector<8x256xf32>
    tpu.vector_store %arg5[%c0_2, %c768], %2 {strides = array<i32>} : memref<8x1024xf32, #tpu.memory_space<vmem>>, vector<8x256xf32>,
    %c0_3 = arith.constant 0 : index
    %c0_4 = arith.constant 0 : index
    %c0_5 = arith.constant 0 : index
    %4 = vector.load %arg1[%c0_3, %c0_4, %c0_5] : memref<2x8x256xf32, #tpu.memory_space<vmem>>, vector<1x8x256xf32>
    %5 = vector.shape_cast %4 : vector<1x8x256xf32> to vector<8x256xf32>
    %c0_6 = arith.constant 0 : index
    %c256 = arith.constant 256 : index
    %6 = vector.load %arg5[%c0_6, %c256] : memref<8x1024xf32, #tpu.memory_space<vmem>>, vector<8x256xf32>
    tpu.vector_store %arg5[%c0_6, %c256], %5 {strides = array<i32>} : memref<8x1024xf32, #tpu.memory_space<vmem>>, vector<8x256xf32>,
    %c1 = arith.constant 1 : index
    %c0_7 = arith.constant 0 : index
    %c0_8 = arith.constant 0 : index
    %7 = vector.load %arg1[%c1, %c0_7, %c0_8] : memref<2x8x256xf32, #tpu.memory_space<vmem>>, vector<1x8x256xf32>
    %8 = vector.shape_cast %7 : vector<1x8x256xf32> to vector<8x256xf32>
    %c0_9 = arith.constant 0 : index
    %c512 = arith.constant 512 : index
    %9 = vector.load %arg5[%c0_9, %c512] : memref<8x1024xf32, #tpu.memory_space<vmem>>, vector<8x256xf32>
    tpu.vector_store %arg5[%c0_9, %c512], %8 {strides = array<i32>} : memref<8x1024xf32, #tpu.memory_space<vmem>>, vector<8x256xf32>,
    %10 = tpu.iota {dimensions = array<i32: 0>} : vector<8x512xi32>
    %c4_i32 = arith.constant 4 : i32
    %11 = vector.broadcast %c4_i32 : i32 to vector<8x512xi32>
    %12 = arith.cmpi slt, %10, %11 : vector<8x512xi32>
    %c0_10 = arith.constant 0 : index
    %c154 = arith.constant 154 : index
    %13 = vector.load %arg5[%c0_10, %c154] : memref<8x1024xf32, #tpu.memory_space<vmem>>, vector<8x512xf32>
    %c0_11 = arith.constant 0 : index
    %c0_12 = arith.constant 0 : index
    %14 = vector.load %arg3[%c0_11, %c0_12] : memref<16x512xf32, #tpu.memory_space<vmem>>, vector<1x512xf32>
    %15 = vector.broadcast %14 : vector<1x512xf32> to vector<8x512xf32>
    %16 = arith.mulf %13, %15 : vector<8x512xf32>
    %c0_13 = arith.constant 0 : index
    %c160 = arith.constant 160 : index
    %17 = vector.load %arg5[%c0_13, %c160] : memref<8x1024xf32, #tpu.memory_space<vmem>>, vector<8x512xf32>
    %c1_14 = arith.constant 1 : index
    %c0_15 = arith.constant 0 : index
    %18 = vector.load %arg3[%c1_14, %c0_15] : memref<16x512xf32, #tpu.memory_space<vmem>>, vector<1x512xf32>
    %19 = vector.broadcast %18 : vector<1x512xf32> to vector<8x512xf32>
    %20 = arith.mulf %17, %19 : vector<8x512xf32>
    %21 = arith.select %12, %16, %20 : vector<8x512xi1>, vector<8x512xf32>
    %c0_16 = arith.constant 0 : index
    %c0_17 = arith.constant 0 : index
    %22 = vector.load %arg6[%c0_16, %c0_17] : memref<72x512xf32, #tpu.memory_space<vmem>>, vector<8x512xf32>
    tpu.vector_store %arg6[%c0_16, %c0_17], %21 {strides = array<i32>} : memref<72x512xf32, #tpu.memory_space<vmem>>, vector<8x512xf32>,
    %c0_18 = arith.constant 0 : index
    %c166 = arith.constant 166 : index
    %23 = vector.load %arg5[%c0_18, %c166] : memref<8x1024xf32, #tpu.memory_space<vmem>>, vector<8x512xf32>
    %c2 = arith.constant 2 : index
    %c0_19 = arith.constant 0 : index
    %24 = vector.load %arg3[%c2, %c0_19] : memref<16x512xf32, #tpu.memory_space<vmem>>, vector<1x512xf32>
    %25 = vector.broadcast %24 : vector<1x512xf32> to vector<8x512xf32>
    %26 = arith.mulf %23, %25 : vector<8x512xf32>
    %c0_20 = arith.constant 0 : index
    %c250 = arith.constant 250 : index
    %27 = vector.load %arg5[%c0_20, %c250] : memref<8x1024xf32, #tpu.memory_space<vmem>>, vector<8x512xf32>
    %c3 = arith.constant 3 : index
    %c0_21 = arith.constant 0 : index
    %28 = vector.load %arg3[%c3, %c0_21] : memref<16x512xf32, #tpu.memory_space<vmem>>, vector<1x512xf32>
    %29 = vector.broadcast %28 : vector<1x512xf32> to vector<8x512xf32>
    %30 = arith.mulf %27, %29 : vector<8x512xf32>
    %31 = arith.select %12, %26, %30 : vector<8x512xi1>, vector<8x512xf32>
    %c8 = arith.constant 8 : index
    %c0_22 = arith.constant 0 : index
    %32 = vector.load %arg6[%c8, %c0_22] : memref<72x512xf32, #tpu.memory_space<vmem>>, vector<8x512xf32>
    tpu.vector_store %arg6[%c8, %c0_22], %31 {strides = array<i32>} : memref<72x512xf32, #tpu.memory_space<vmem>>, vector<8x512xf32>,
    %c0_23 = arith.constant 0 : index
    %c256_24 = arith.constant 256 : index
    %33 = vector.load %arg5[%c0_23, %c256_24] : memref<8x1024xf32, #tpu.memory_space<vmem>>, vector<8x512xf32>
    %c0_25 = arith.constant 0 : index
    %c262 = arith.constant 262 : index
    %34 = vector.load %arg5[%c0_25, %c262] : memref<8x1024xf32, #tpu.memory_space<vmem>>, vector<8x512xf32>
    %c4 = arith.constant 4 : index
    %c0_26 = arith.constant 0 : index
    %35 = vector.load %arg3[%c4, %c0_26] : memref<16x512xf32, #tpu.memory_space<vmem>>, vector<1x512xf32>
    %36 = vector.broadcast %35 : vector<1x512xf32> to vector<8x512xf32>
    %37 = arith.mulf %34, %36 : vector<8x512xf32>
    %38 = arith.select %12, %33, %37 : vector<8x512xi1>, vector<8x512xf32>
    %c16 = arith.constant 16 : index
    %c0_27 = arith.constant 0 : index
    %39 = vector.load %arg6[%c16, %c0_27] : memref<72x512xf32, #tpu.memory_space<vmem>>, vector<8x512xf32>
    tpu.vector_store %arg6[%c16, %c0_27], %38 {strides = array<i32>} : memref<72x512xf32, #tpu.memory_space<vmem>>, vector<8x512xf32>,
    %c0_28 = arith.constant 0 : index
    %c346 = arith.constant 346 : index
    %40 = vector.load %arg5[%c0_28, %c346] : memref<8x1024xf32, #tpu.memory_space<vmem>>, vector<8x512xf32>
    %c5 = arith.constant 5 : index
    %c0_29 = arith.constant 0 : index
    %41 = vector.load %arg3[%c5, %c0_29] : memref<16x512xf32, #tpu.memory_space<vmem>>, vector<1x512xf32>
    %42 = vector.broadcast %41 : vector<1x512xf32> to vector<8x512xf32>
    %43 = arith.mulf %40, %42 : vector<8x512xf32>
    %c0_30 = arith.constant 0 : index
    %c352 = arith.constant 352 : index
    %44 = vector.load %arg5[%c0_30, %c352] : memref<8x1024xf32, #tpu.memory_space<vmem>>, vector<8x512xf32>
    %c6 = arith.constant 6 : index
    %c0_31 = arith.constant 0 : index
    %45 = vector.load %arg3[%c6, %c0_31] : memref<16x512xf32, #tpu.memory_space<vmem>>, vector<1x512xf32>
    %46 = vector.broadcast %45 : vector<1x512xf32> to vector<8x512xf32>
    %47 = arith.mulf %44, %46 : vector<8x512xf32>
    %48 = arith.select %12, %43, %47 : vector<8x512xi1>, vector<8x512xf32>
    %c24 = arith.constant 24 : index
    %c0_32 = arith.constant 0 : index
    %49 = vector.load %arg6[%c24, %c0_32] : memref<72x512xf32, #tpu.memory_space<vmem>>, vector<8x512xf32>
    tpu.vector_store %arg6[%c24, %c0_32], %48 {strides = array<i32>} : memref<72x512xf32, #tpu.memory_space<vmem>>, vector<8x512xf32>,
    %c0_33 = arith.constant 0 : index
    %c358 = arith.constant 358 : index
    %50 = vector.load %arg5[%c0_33, %c358] : memref<8x1024xf32, #tpu.memory_space<vmem>>, vector<8x512xf32>
    %c7 = arith.constant 7 : index
    %c0_34 = arith.constant 0 : index
    %51 = vector.load %arg3[%c7, %c0_34] : memref<16x512xf32, #tpu.memory_space<vmem>>, vector<1x512xf32>
    %52 = vector.broadcast %51 : vector<1x512xf32> to vector<8x512xf32>
    %53 = arith.mulf %50, %52 : vector<8x512xf32>
    %c0_35 = arith.constant 0 : index
    %c52 = arith.constant 52 : index
    %54 = vector.load %arg5[%c0_35, %c52] : memref<8x1024xf32, #tpu.memory_space<vmem>>, vector<8x512xf32>
    %c8_36 = arith.constant 8 : index
    %c0_37 = arith.constant 0 : index
    %55 = vector.load %arg3[%c8_36, %c0_37] : memref<16x512xf32, #tpu.memory_space<vmem>>, vector<1x512xf32>
    %56 = vector.broadcast %55 : vector<1x512xf32> to vector<8x512xf32>
    %57 = arith.mulf %54, %56 : vector<8x512xf32>
    %58 = arith.select %12, %53, %57 : vector<8x512xi1>, vector<8x512xf32>
    %c32 = arith.constant 32 : index
    %c0_38 = arith.constant 0 : index
    %59 = vector.load %arg6[%c32, %c0_38] : memref<72x512xf32, #tpu.memory_space<vmem>>, vector<8x512xf32>
    tpu.vector_store %arg6[%c32, %c0_38], %58 {strides = array<i32>} : memref<72x512xf32, #tpu.memory_space<vmem>>, vector<8x512xf32>,
    %c0_39 = arith.constant 0 : index
    %c64 = arith.constant 64 : index
    %60 = vector.load %arg5[%c0_39, %c64] : memref<8x1024xf32, #tpu.memory_space<vmem>>, vector<8x512xf32>
    %c9 = arith.constant 9 : index
    %c0_40 = arith.constant 0 : index
    %61 = vector.load %arg3[%c9, %c0_40] : memref<16x512xf32, #tpu.memory_space<vmem>>, vector<1x512xf32>
    %62 = vector.broadcast %61 : vector<1x512xf32> to vector<8x512xf32>
    %63 = arith.mulf %60, %62 : vector<8x512xf32>
    %c0_41 = arith.constant 0 : index
    %c76 = arith.constant 76 : index
    %64 = vector.load %arg5[%c0_41, %c76] : memref<8x1024xf32, #tpu.memory_space<vmem>>, vector<8x512xf32>
    %c10 = arith.constant 10 : index
    %c0_42 = arith.constant 0 : index
    %65 = vector.load %arg3[%c10, %c0_42] : memref<16x512xf32, #tpu.memory_space<vmem>>, vector<1x512xf32>
    %66 = vector.broadcast %65 : vector<1x512xf32> to vector<8x512xf32>
    %67 = arith.mulf %64, %66 : vector<8x512xf32>
    %68 = arith.select %12, %63, %67 : vector<8x512xi1>, vector<8x512xf32>
    %c40 = arith.constant 40 : index
    %c0_43 = arith.constant 0 : index
    %69 = vector.load %arg6[%c40, %c0_43] : memref<72x512xf32, #tpu.memory_space<vmem>>, vector<8x512xf32>
    tpu.vector_store %arg6[%c40, %c0_43], %68 {strides = array<i32>} : memref<72x512xf32, #tpu.memory_space<vmem>>, vector<8x512xf32>,
    %c0_44 = arith.constant 0 : index
    %c244 = arith.constant 244 : index
    %70 = vector.load %arg5[%c0_44, %c244] : memref<8x1024xf32, #tpu.memory_space<vmem>>, vector<8x512xf32>
    %c11 = arith.constant 11 : index
    %c0_45 = arith.constant 0 : index
    %71 = vector.load %arg3[%c11, %c0_45] : memref<16x512xf32, #tpu.memory_space<vmem>>, vector<1x512xf32>
    %72 = vector.broadcast %71 : vector<1x512xf32> to vector<8x512xf32>
    %73 = arith.mulf %70, %72 : vector<8x512xf32>
    %c0_46 = arith.constant 0 : index
    %c268 = arith.constant 268 : index
    %74 = vector.load %arg5[%c0_46, %c268] : memref<8x1024xf32, #tpu.memory_space<vmem>>, vector<8x512xf32>
    %c12 = arith.constant 12 : index
    %c0_47 = arith.constant 0 : index
    %75 = vector.load %arg3[%c12, %c0_47] : memref<16x512xf32, #tpu.memory_space<vmem>>, vector<1x512xf32>
    %76 = vector.broadcast %75 : vector<1x512xf32> to vector<8x512xf32>
    %77 = arith.mulf %74, %76 : vector<8x512xf32>
    %78 = arith.select %12, %73, %77 : vector<8x512xi1>, vector<8x512xf32>
    %c48 = arith.constant 48 : index
    %c0_48 = arith.constant 0 : index
    %79 = vector.load %arg6[%c48, %c0_48] : memref<72x512xf32, #tpu.memory_space<vmem>>, vector<8x512xf32>
    tpu.vector_store %arg6[%c48, %c0_48], %78 {strides = array<i32>} : memref<72x512xf32, #tpu.memory_space<vmem>>, vector<8x512xf32>,
    %c0_49 = arith.constant 0 : index
    %c436 = arith.constant 436 : index
    %80 = vector.load %arg5[%c0_49, %c436] : memref<8x1024xf32, #tpu.memory_space<vmem>>, vector<8x512xf32>
    %c13 = arith.constant 13 : index
    %c0_50 = arith.constant 0 : index
    %81 = vector.load %arg3[%c13, %c0_50] : memref<16x512xf32, #tpu.memory_space<vmem>>, vector<1x512xf32>
    %82 = vector.broadcast %81 : vector<1x512xf32> to vector<8x512xf32>
    %83 = arith.mulf %80, %82 : vector<8x512xf32>
    %c0_51 = arith.constant 0 : index
    %c448 = arith.constant 448 : index
    %84 = vector.load %arg5[%c0_51, %c448] : memref<8x1024xf32, #tpu.memory_space<vmem>>, vector<8x512xf32>
    %c14 = arith.constant 14 : index
    %c0_52 = arith.constant 0 : index
    %85 = vector.load %arg3[%c14, %c0_52] : memref<16x512xf32, #tpu.memory_space<vmem>>, vector<1x512xf32>
    %86 = vector.broadcast %85 : vector<1x512xf32> to vector<8x512xf32>
    %87 = arith.mulf %84, %86 : vector<8x512xf32>
    %88 = arith.select %12, %83, %87 : vector<8x512xi1>, vector<8x512xf32>
    %c56 = arith.constant 56 : index
    %c0_53 = arith.constant 0 : index
    %89 = vector.load %arg6[%c56, %c0_53] : memref<72x512xf32, #tpu.memory_space<vmem>>, vector<8x512xf32>
    tpu.vector_store %arg6[%c56, %c0_53], %88 {strides = array<i32>} : memref<72x512xf32, #tpu.memory_space<vmem>>, vector<8x512xf32>,
    %c0_54 = arith.constant 0 : index
    %c460 = arith.constant 460 : index
    %90 = vector.load %arg5[%c0_54, %c460] : memref<8x1024xf32, #tpu.memory_space<vmem>>, vector<8x512xf32>
    %c15 = arith.constant 15 : index
    %c0_55 = arith.constant 0 : index
    %91 = vector.load %arg3[%c15, %c0_55] : memref<16x512xf32, #tpu.memory_space<vmem>>, vector<1x512xf32>
    %92 = vector.broadcast %91 : vector<1x512xf32> to vector<8x512xf32>
    %93 = arith.mulf %90, %92 : vector<8x512xf32>
    %cst_56 = arith.constant 1.000000e+00 : f32
    %94 = vector.broadcast %cst_56 : f32 to vector<8x512xf32>
    %95 = arith.select %12, %93, %94 : vector<8x512xi1>, vector<8x512xf32>
    %c64_57 = arith.constant 64 : index
    %c0_58 = arith.constant 0 : index
    %96 = vector.load %arg6[%c64_57, %c0_58] : memref<72x512xf32, #tpu.memory_space<vmem>>, vector<8x512xf32>
    tpu.vector_store %arg6[%c64_57, %c0_58], %95 {strides = array<i32>} : memref<72x512xf32, #tpu.memory_space<vmem>>, vector<8x512xf32>,
    %c0_59 = arith.constant 0 : index
    %c0_60 = arith.constant 0 : index
    %97 = vector.load %arg2[%c0_59, %c0_60] : memref<5x72xf32, #tpu.memory_space<vmem>>, vector<5x72xf32>
    %c0_61 = arith.constant 0 : index
    %c0_62 = arith.constant 0 : index
    %98 = vector.load %arg6[%c0_61, %c0_62] : memref<72x512xf32, #tpu.memory_space<vmem>>, vector<72x512xf32>
    %cst_63 = arith.constant dense<0.000000e+00> : vector<5x512xf32>
    %99 = tpu.matmul %97, %98, %cst_63 {dimension_numbers = #tpu.dot_dimension_numbers<[1], [0], [0], [1], [0, 0, 1, 1], [], []>} : vector<5x72xf32>, vector<72x512xf32>, vector<5x512xf32> -> vector<5x512xf32>
    %100 = vector.extract_strided_slice %99 {offsets = [0, 0], sizes = [5, 256], strides = [1, 1]} : vector<5x512xf32> to vector<5x256xf32>
    %c0_64 = arith.constant 0 : index
    %c0_65 = arith.constant 0 : index
    %c0_66 = arith.constant 0 : index
    %101 = vector.load %arg4[%c0_64, %c0_65, %c0_66] : memref<2x5x256xf32, #tpu.memory_space<vmem>>, vector<1x5x256xf32>
    %102 = vector.shape_cast %101 : vector<1x5x256xf32> to vector<5x256xf32>
    %103 = vector.shape_cast %100 : vector<5x256xf32> to vector<1x5x256xf32>
    tpu.vector_store %arg4[%c0_64, %c0_65, %c0_66], %103 {strides = array<i32>} : memref<2x5x256xf32, #tpu.memory_space<vmem>>, vector<1x5x256xf32>,
    %104 = vector.extract_strided_slice %99 {offsets = [0, 256], sizes = [5, 256], strides = [1, 1]} : vector<5x512xf32> to vector<5x256xf32>
    %c1_67 = arith.constant 1 : index
    %c0_68 = arith.constant 0 : index
    %c0_69 = arith.constant 0 : index
    %105 = vector.load %arg4[%c1_67, %c0_68, %c0_69] : memref<2x5x256xf32, #tpu.memory_space<vmem>>, vector<1x5x256xf32>
    %106 = vector.shape_cast %105 : vector<1x5x256xf32> to vector<5x256xf32>
    %107 = vector.shape_cast %104 : vector<5x256xf32> to vector<1x5x256xf32>
    tpu.vector_store %arg4[%c1_67, %c0_68, %c0_69], %107 {strides = array<i32>} : memref<2x5x256xf32, #tpu.memory_space<vmem>>, vector<1x5x256xf32>,
    return
  }
  func.func @transform_0(%arg0: i32) -> (i32, i32, i32) {
    %c0_i32 = arith.constant 0 : i32
    %c0_i32_0 = arith.constant 0 : i32
    %c0_i32_1 = arith.constant 0 : i32
    %c0_i32_2 = arith.constant 0 : i32
    return %c0_i32, %c0_i32_0, %c0_i32_1 : i32, i32, i32
  }
  func.func @transform_1(%arg0: i32) -> (i32, i32) {
    %c0_i32 = arith.constant 0 : i32
    %c0_i32_0 = arith.constant 0 : i32
    %c0_i32_1 = arith.constant 0 : i32
    return %c0_i32, %c0_i32_0 : i32, i32
  }
  func.func @transform_2(%arg0: i32) -> (i32, i32) {
    %c0_i32 = arith.constant 0 : i32
    %c0_i32_0 = arith.constant 0 : i32
    %c0_i32_1 = arith.constant 0 : i32
    return %c0_i32, %c0_i32_0 : i32, i32
  }
  func.func @transform_3(%arg0: i32) -> (i32, i32, i32) {
    %c0_i32 = arith.constant 0 : i32
    %c0_i32_0 = arith.constant 0 : i32
    %c0_i32_1 = arith.constant 0 : i32
    %c0_i32_2 = arith.constant 0 : i32
    return %c0_i32, %c0_i32_0, %c0_i32_1 : i32, i32, i32
  }
}

</mosaic_0001>

<bundles_post_ra>
// kernel: tpu_custom_call.1
= control target key start
LH: loop header
LB: loop body
LE: loop exit
PB: predicated region body
PF: predicated region fallthrough
CT: control target
= control target key end

     0   :  { %8 = vsyncpa [#allocation5], 0  ;;  %s2512_s0 = inlined_call_operand.hbm [shape: f32[2,8,256], index: 0, kind: input, shape index: {}]   ;;  %s2513_s1 = inlined_call_operand.hbm [shape: f32[5,72], index: 1, kind: input, shape index: {}]   ;;  %s2514_s2 = inlined_call_operand.hbm [shape: f32[16,512], index: 2, kind: input, shape index: {}]   ;;  %s2515_s3 = inlined_call_operand.vmem [shape: f32[2,5,256], index: 3, kind: output, shape index: {}]  }
   0x1   :  { %9 = vsyncpa [#allocation7], 0  ;;  %s1710_s12 = smov [#allocation6]   ;;  %s1711_s14 = smov [#allocation4]  }
   0x2   :  { %s28_s13 = sshll.u32 %s1710_s12, 4  ;;  %s15_s15 = sshll.u32 %s1711_s14, 4  ;;  %s29_s13 = int_to_ptr.vmem [resolvable:$true] %s28_s13  ;;  %s1753_s15 = int_to_ptr.vmem [resolvable:$true] %s15_s15 }
   0x3   :  { %s1640_s18 = scalar_lea.hbm %s2513_s1, 128 }
   0x4   :  { %p1641_p0 = scmp.ne.s32.totalorder %s2513_s1, %s1640_s18  ;;  %p1644_p1 = scmp.lt.u32.totalorder %s1640_s18, %s2513_s1 }
   0x6   :  { %p1646_p2 = pnand %p1644_p1, %p1641_p0 }
   0x8   :  { %1649 = shalt.err (!%p1646_p2)
}
   0x9   :  { %s1650_s23 = scalar_lea.vmem %s29_s13, 128  ;;  %p1655_p4 = scmp.lt.s32.totalorder %s29_s13, %s29_s13 }
   0xa   :  { %p1651_p3 = scmp.ne.s32.totalorder %s29_s13, %s1650_s23  ;;  %p1656_p5 = scmp.lt.s32.totalorder %s1650_s23, %s1650_s23 }
   0xc   :  { %p1657_p6 = por %p1656_p5, %p1655_p4 }
   0xe   :  { %p1658_p7 = pnand %p1657_p6, %p1651_p3 }
  0x10   :  { %1661 = shalt.err (!%p1658_p7)
}
  0x11   :  { %31 = dma.hbm_to_vmem [thread:$0]  %s2513_s1, 128, %s29_s13, [#allocation7]  }
  0x12   :  { %s1662_s28 = scalar_lea.hbm %s2512_s0, 512 }
  0x13   :  { %p1663_p8 = scmp.ne.s32.totalorder %s2512_s0, %s1662_s28  ;;  %p1666_p9 = scmp.lt.u32.totalorder %s1662_s28, %s2512_s0 }
  0x15   :  { %p1668_p10 = pnand %p1666_p9, %p1663_p8 }
  0x17   :  { %1671 = shalt.err (!%p1668_p10)
}
  0x18   :  { %s1672_s6 = scalar_lea.vmem %s1753_s15, 512  ;;  %p1677_p12 = scmp.lt.s32.totalorder %s1753_s15, %s1753_s15 }
  0x19   :  { %p1673_p11 = scmp.ne.s32.totalorder %s1753_s15, %s1672_s6  ;;  %p1678_p13 = scmp.lt.s32.totalorder %s1672_s6, %s1672_s6 }
  0x1b   :  { %p1679_p0 = por %p1678_p13, %p1677_p12 }
  0x1d   :  { %p1680_p1 = pnand %p1679_p0, %p1673_p11 }
  0x1f   :  { %1683 = shalt.err (!%p1680_p1)
}
  0x20   :  { %s1712_s1 = smov 256   ;;  %s1713_s7 = smov 16  }
  0x21   :  { %21 = dma.hbm_to_vmem [thread:$0]  %s2512_s0, 512, %s1753_s15, [#allocation5], %s1712_s1, %s1712_s1, %s1713_s7  }
  0x22   :  { %s1714_s10 = smov [#allocation8]   ;;  %s1684_s14 = scalar_lea.hbm %s2514_s2, 1024 }
  0x23   :  { %s37_s11 = sshll.u32 %s1714_s10, 4  ;;  %p1685_p2 = scmp.ne.s32.totalorder %s2514_s2, %s1684_s14  ;;  %s38_s11 = int_to_ptr.vmem [resolvable:$true] %s37_s11 }
  0x24   :  { %p1688_p3 = scmp.lt.u32.totalorder %s1684_s14, %s2514_s2 }
  0x26   :  { %p1690_p4 = pnand %p1688_p3, %p1685_p2 }
  0x28   :  { %1693 = shalt.err (!%p1690_p4)
}
  0x29   :  { %s1694_s20 = scalar_lea.vmem %s38_s11, 1024  ;;  %p1699_p6 = scmp.lt.s32.totalorder %s38_s11, %s38_s11 }
  0x2a   :  { %p1695_p5 = scmp.ne.s32.totalorder %s38_s11, %s1694_s20  ;;  %p1700_p7 = scmp.lt.s32.totalorder %s1694_s20, %s1694_s20 }
  0x2c   :  { %p1701_p8 = por %p1700_p7, %p1699_p6 }
  0x2e   :  { %p1702_p9 = pnand %p1701_p8, %p1695_p5 }
  0x30   :  { %1705 = shalt.err (!%p1702_p9)
}
  0x31   :  { %s1715_s0 = smov 512   ;;  %s1716_s15 = smov 32  }
  0x32   :  { %43 = dma.hbm_to_vmem [thread:$0]  %s2514_s2, 1024, %s38_s11, [#allocation7], %s1715_s0, %s1715_s0, %s1716_s15  }
  0x33   :  { %1706 = dma.done.wait [#allocation5], 512  }
  0x34   :  { %1707 = vsyncadd [#allocation5], 4294966784 }
  0x35   :  { %1708 = dma.done.wait [#allocation7], 1152  }
  0x36   :  { %1709 = vsyncadd [#allocation7], 4294966144  ;;  %v66_v0 = vlaneseq  ;;  %v115_v6 = vld [vmem:[#allocation8 + $0x1] ss:$8 sm:$0xf]  ;;  %s1717_s2 = smov 122  }
  0x37   :  { %v260_v11 = vld [vmem:[#allocation8 + $0x3] ss:$8 sm:$0xf]  ;;  %v480_v16 = vld [vmem:[#allocation8 + $0x6] ss:$8 sm:$0xf] }
  0x38   :  { %v1796_v1 = vshrl.u32 %v66_v0, 7  ;;  %s1718_s23 = smov 96   ;;  %v624_v21 = vld [vmem:[#allocation8 + $0x20] ss:$8 sm:$0xf]  ;;  %s1719_s24 = smov 52  }
  0x39   :  { %v768_v26 = vld [vmem:[#allocation8 + $0x22] ss:$8 sm:$0xf]  ;;  %s1720_s25 = smov 76   ;;  %s1721_s26 = smov 12   ;;  %vm141_vm0 = vcmask 261120  }
  0x3a   :  { %v1799_v2 = vsub.s32 2, %v1796_v1  ;;  %v1802_v3 = vsub.s32 0, %v1796_v1  ;;  %v1805_v4 = vsub.s32 3, %v1796_v1  ;;  %v1808_v5 = vsub.s32 1, %v1796_v1  ;;  %s1722_s27 = smov 64   ;;  %s1723_s28 = smov 26  }
  0x3b   :  { %v912_v31 = vld [vmem:[#allocation8 + $0x24] ss:$8 sm:$0xf]  ;;  %v1055_v36 = vld [vmem:[#allocation8 + $0x26] ss:$8 sm:$0xf] }
  0x3c   :  { %v128_v7 = vrot.slane %v115_v6, %v1799_v2  ;;  %v120_v8 = vrot.slane %v115_v6, %v1802_v3  ;;  %v132_v9 = vrot.slane %v115_v6, %v1805_v4  ;;  %v124_v10 = vrot.slane %v115_v6, %v1808_v5  ;;  %v74_v41 = vld [vmem:[#allocation8] ss:$8 sm:$0xf]  ;;  %v219_v46 = vld [vmem:[#allocation8 + $0x2] ss:$8 sm:$0xf] }
  0x3d   :  { %v269_v12 = vrot.slane %v260_v11, %v1808_v5  ;;  %v265_v13 = vrot.slane %v260_v11, %v1802_v3  ;;  %v277_v14 = vrot.slane %v260_v11, %v1805_v4  ;;  %v273_v15 = vrot.slane %v260_v11, %v1799_v2  ;;  %s1724_s29 = smov 38   ;;  %v363_v51 = vld [vmem:[#allocation8 + $0x4] ss:$8 sm:$0xf]  ;;  %s1725_s30 = smov 6  }
  0x3e   :  { %137 = vrot.lane.b32.xlu1 %v128_v7, %s1716_s15  ;;  %133 = vrot.lane.b32.xlu0 %v120_v8, %s1716_s15  ;;  %v489_v17 = vrot.slane %v480_v16, %v1808_v5  ;;  %v485_v18 = vrot.slane %v480_v16, %v1802_v3  ;;  %v497_v19 = vrot.slane %v480_v16, %v1805_v4  ;;  %v440_v56 = vld [vmem:[#allocation8 + $0x5] ss:$8 sm:$0xf]  ;;  %s1726_s4 = smov 90   ;;  %s1727_s5 = smov 102   ;;  %vm170_vm1 = vcmask 998400  }
  0x3f   :  { %v493_v20 = vrot.slane %v480_v16, %v1799_v2  ;;  %v633_v22 = vrot.slane %v624_v21, %v1808_v5  ;;  %v629_v23 = vrot.slane %v624_v21, %v1802_v3  ;;  %v641_v24 = vrot.slane %v624_v21, %v1805_v4  ;;  %v582_v61 = vld [vmem:[#allocation8 + $0x7] ss:$8 sm:$0xf]  ;;  %v727_v7 = vld [vmem:[#allocation8 + $0x21] ss:$8 sm:$0xf] }
  0x40   :  { %v637_v25 = vrot.slane %v624_v21, %v1799_v2  ;;  %v777_v27 = vrot.slane %v768_v26, %v1808_v5  ;;  %v773_v28 = vrot.slane %v768_v26, %v1802_v3  ;;  %v785_v29 = vrot.slane %v768_v26, %v1805_v4  ;;  %s1728_s6 = smov 44   ;;  %s1729_s1 = smov 50  }
  0x41   :  { %v781_v30 = vrot.slane %v768_v26, %v1799_v2  ;;  %v921_v32 = vrot.slane %v912_v31, %v1808_v5  ;;  %v917_v33 = vrot.slane %v912_v31, %v1802_v3  ;;  %v929_v34 = vrot.slane %v912_v31, %v1805_v4  ;;  %v1910_v26 = vld [vmem:[#allocation4 + $0x18] sm:$0xff]  ;;  %s1730_s7 = smov 116   ;;  %s1731_s8 = smov 104  }
  0x42   :  { %139 = vrot.lane.b32.xlu1 %v132_v9, %s1716_s15  ;;  %135 = vrot.lane.b32.xlu0 %v124_v10, %s1716_s15  ;;  %v925_v35 = vrot.slane %v912_v31, %v1799_v2  ;;  %v1064_v37 = vrot.slane %v1055_v36, %v1808_v5  ;;  %v1060_v38 = vrot.slane %v1055_v36, %v1802_v3  ;;  %vm650_vm2 = vcmask 424960  }
  0x43   :  { %v1072_v39 = vrot.slane %v1055_v36, %v1805_v4  ;;  %v1068_v40 = vrot.slane %v1055_v36, %v1799_v2  ;;  %v83_v42 = vrot.slane %v74_v41, %v1808_v5  ;;  %v79_v43 = vrot.slane %v74_v41, %v1802_v3 }
  0x44   :  { %v91_v44 = vrot.slane %v74_v41, %v1805_v4  ;;  %v87_v45 = vrot.slane %v74_v41, %v1799_v2  ;;  %v228_v47 = vrot.slane %v219_v46, %v1808_v5  ;;  %v224_v48 = vrot.slane %v219_v46, %v1802_v3 }
  0x45   :  { %v236_v49 = vrot.slane %v219_v46, %v1805_v4  ;;  %v232_v50 = vrot.slane %v219_v46, %v1799_v2  ;;  %v372_v52 = vrot.slane %v363_v51, %v1808_v5  ;;  %v368_v53 = vrot.slane %v363_v51, %v1802_v3 }
  0x46   :  { %280 = vrot.lane.b32.xlu1 %v269_v12, %s1717_s2  ;;  %278 = vrot.lane.b32.xlu0 %v265_v13, %s1717_s2  ;;  %v380_v54 = vrot.slane %v363_v51, %v1805_v4  ;;  %v376_v55 = vrot.slane %v363_v51, %v1799_v2  ;;  %v449_v57 = vrot.slane %v440_v56, %v1808_v5  ;;  %vm794_vm3 = vcmask 621568  }
  0x47   :  { %v445_v58 = vrot.slane %v440_v56, %v1802_v3  ;;  %v457_v59 = vrot.slane %v440_v56, %v1805_v4  ;;  %v453_v60 = vrot.slane %v440_v56, %v1799_v2  ;;  %v591_v62 = vrot.slane %v582_v61, %v1808_v5 }
  0x48   :  { %v587_v63 = vrot.slane %v582_v61, %v1802_v3  ;;  %v599_v0 = vrot.slane %v582_v61, %v1805_v4  ;;  %v595_v6 = vrot.slane %v582_v61, %v1799_v2  ;;  %v736_v8 = vrot.slane %v727_v7, %v1808_v5 }
  0x49   :  { %v732_v9 = vrot.slane %v727_v7, %v1802_v3  ;;  %v744_v10 = vrot.slane %v727_v7, %v1805_v4  ;;  %v740_v11 = vrot.slane %v727_v7, %v1799_v2  ;;  %vm506_vm4 = vcmask 785408  }
  0x4a   :  { %284 = vrot.lane.b32.xlu1 %v277_v14, %s1717_s2  ;;  %282 = vrot.lane.b32.xlu0 %v273_v15, %s1717_s2  ;;  %vm753_vm5 = vcmask 523264   ;;  %vm100_vm6 = vcmask 211968   ;;  %vm938_vm7 = vcmask 97280   ;;  %vm245_vm8 = vcmask 310272  }
  0x4b   :  { %vm389_vm9 = vcmask 48128   ;;  %vm344_vm10 = vcmask 736256   ;;  %vm200_vm11 = vcmask 834560   ;;  %vm68_vm12 = vcmp.lt.s32.totalorder %v1796_v1, 4 }
  0x4c   :  { %vm314_vm13 = vcmask 359424   ;;  %vm823_vm14 = vcmask 949248   ;;  %vm679_vm15 = vcmask 408576  }
  0x4e   :  { %500 = vrot.lane.b32.xlu1 %v489_v17, %s1718_s23  ;;  %498 = vrot.lane.b32.xlu0 %v485_v18, %s1718_s23 }
  0x52   :  { %504 = vrot.lane.b32.xlu1 %v497_v19, %s1718_s23  ;;  %502 = vrot.lane.b32.xlu0 %v493_v20, %s1718_s23 }
  0x56   :  { %644 = vrot.lane.b32.xlu1 %v633_v22, %s1719_s24  ;;  %642 = vrot.lane.b32.xlu0 %v629_v23, %s1719_s24  ;;  %v1905_v23 = vld [vmem:[#allocation4] sm:$0xff] }
  0x5a   :  { %648 = vrot.lane.b32.xlu1 %v641_v24, %s1719_s24  ;;  %646 = vrot.lane.b32.xlu0 %v637_v25, %s1719_s24  ;;  %v1908_v25 = vld [vmem:[#allocation4 + $0x10] sm:$0xff] }
  0x5e   :  { %788 = vrot.lane.b32.xlu1 %v777_v27, %s1720_s25  ;;  %786 = vrot.lane.b32.xlu0 %v773_v28, %s1720_s25 }
  0x62   :  { %792 = vrot.lane.b32.xlu1 %v785_v29, %s1720_s25  ;;  %790 = vrot.lane.b32.xlu0 %v781_v30, %s1720_s25 }
  0x66   :  { %932 = vrot.lane.b32.xlu1 %v921_v32, %s1721_s26  ;;  %930 = vrot.lane.b32.xlu0 %v917_v33, %s1721_s26 }
  0x6a   :  { %936 = vrot.lane.b32.xlu1 %v929_v34, %s1721_s26  ;;  %934 = vrot.lane.b32.xlu0 %v925_v35, %s1721_s26 }
  0x6e   :  { %1075 = vrot.lane.b32.xlu1 %v1064_v37, %s1722_s27  ;;  %1073 = vrot.lane.b32.xlu0 %v1060_v38, %s1722_s27  ;;  %v1919_v38 = vld [vmem:[#allocation4 + $0x8] sm:$0xff] }
  0x72   :  { %1079 = vrot.lane.b32.xlu1 %v1072_v39, %s1722_s27  ;;  %1077 = vrot.lane.b32.xlu0 %v1068_v40, %s1722_s27 }
  0x76   :  { %94 = vrot.lane.b32.xlu1 %v83_v42, %s1723_s28  ;;  %92 = vrot.lane.b32.xlu0 %v79_v43, %s1723_s28 }
  0x7a   :  { %98 = vrot.lane.b32.xlu1 %v91_v44, %s1723_s28  ;;  %96 = vrot.lane.b32.xlu0 %v87_v45, %s1723_s28 }
  0x7e   :  { %239 = vrot.lane.b32.xlu1 %v228_v47, %s1724_s29  ;;  %237 = vrot.lane.b32.xlu0 %v224_v48, %s1724_s29 }
  0x82   :  { %243 = vrot.lane.b32.xlu1 %v236_v49, %s1724_s29  ;;  %241 = vrot.lane.b32.xlu0 %v232_v50, %s1724_s29 }
  0x86   :  { %383 = vrot.lane.b32.xlu1 %v372_v52, %s1725_s30  ;;  %381 = vrot.lane.b32.xlu0 %v368_v53, %s1725_s30 }
  0x8a   :  { %387 = vrot.lane.b32.xlu1 %v380_v54, %s1725_s30  ;;  %385 = vrot.lane.b32.xlu0 %v376_v55, %s1725_s30 }
  0x8e   :  { %460 = vrot.lane.b32.xlu1 %v449_v57, %s1726_s4  ;;  %458 = vrot.lane.b32.xlu0 %v445_v58, %s1726_s4 }
  0x92   :  { %464 = vrot.lane.b32.xlu1 %v457_v59, %s1726_s4  ;;  %462 = vrot.lane.b32.xlu0 %v453_v60, %s1726_s4 }
  0x96   :  { %602 = vrot.lane.b32.xlu1 %v591_v62, %s1727_s5  ;;  %600 = vrot.lane.b32.xlu0 %v587_v63, %s1727_s5 }
  0x9a   :  { %606 = vrot.lane.b32.xlu1 %v599_v0, %s1727_s5  ;;  %604 = vrot.lane.b32.xlu0 %v595_v6, %s1727_s5 }
  0x9e   :  { %747 = vrot.lane.b32.xlu1 %v736_v8, %s1722_s27  ;;  %745 = vrot.lane.b32.xlu0 %v732_v9, %s1722_s27 }
  0xa2   :  { %751 = vrot.lane.b32.xlu1 %v744_v10, %s1722_s27  ;;  %749 = vrot.lane.b32.xlu0 %v740_v11, %s1722_s27 }
  0xb0   :  { %v138_v12 = vpop.permute.xlu1 %137  ;;  %v1902_v13 = vpop.permute.xlu0 %133 }
  0xb4   :  { %v140_v14 = vpop.permute.xlu1 %139  ;;  %v136_v15 = vpop.permute.xlu0 %135 }
  0xb5   :  { %v144_v27 = vsel %vm141_vm0, %v138_v12, %v140_v14  ;;  %v154_v32 = vmul.f32 %v140_v14, %v1910_v26  ;;  %v142_v37 = vsel %vm141_vm0, %v1902_v13, %v136_v15  ;;  %v143_v39 = vsel %vm141_vm0, %v136_v15, %v138_v12 }
  0xb6   :  { %v153_v31 = vmul.f32 %v144_v27, %v1908_v25  ;;  %v151_v43 = vmul.f32 %v142_v37, %v1905_v23  ;;  %v152_v46 = vmul.f32 %v143_v39, %v1919_v38  ;;  %v150_v14 = vmul.f32 0.0, %v1902_v13  ;;  %v871_v39 = vld [vmem:[#allocation8 + $0x23] ss:$8 sm:$0xf] }
  0xb7   :  { %vm967_vm0 = vcmask 850944  }
  0xb8   :  { %v281_v16 = vpop.permute.xlu1 %280  ;;  %v279_v17 = vpop.permute.xlu0 %278  ;;  %v1490_v42 = vpack.i.bf16 %v154_v32, %v153_v31  ;;  %v1485_v59 = vpack.i.bf16 %v152_v46, %v151_v43 }
  0xb9   :  { %v294_v18 = vmul.f32 0.0, %v279_v17  ;;  %v286_v54 = vsel %vm170_vm1, %v279_v17, %v281_v16 }
  0xba   :  { %v295_v61 = vmul.f32 %v286_v54, %v1905_v23 }
  0xbb   :  { %304 = vrot.lane.b32.xlu1 %v294_v18, %s1728_s6 }
  0xbc   :  { %v285_v19 = vpop.permute.xlu1 %284  ;;  %v283_v20 = vpop.permute.xlu0 %282 }
  0xbd   :  { %v288_v34 = vsel %vm170_vm1, %v283_v20, %v285_v19  ;;  %v298_v40 = vmul.f32 %v285_v19, %v1910_v26  ;;  %v287_v50 = vsel %vm170_vm1, %v281_v16, %v283_v20 }
  0xbe   :  { %v297_v41 = vmul.f32 %v288_v34, %v1908_v25  ;;  %v296_v57 = vmul.f32 %v287_v50, %v1919_v38  ;;  %v884_v50 = vrot.slane %v871_v39, %v1799_v2 }
  0xc0   :  { %v501_v21 = vpop.permute.xlu1 %500  ;;  %v499_v22 = vpop.permute.xlu0 %498  ;;  %v1500_v53 = vpack.i.bf16 %v298_v40, %v297_v41  ;;  %v1495_v9 = vpack.i.bf16 %v296_v57, %v295_v61 }
  0xc1   :  { %v515_v24 = vmul.f32 %v499_v22, %v1905_v23  ;;  %v507_v60 = vsel %vm506_vm4, %v499_v22, %v501_v21 }
  0xc2   :  { %v516_v7 = vmul.f32 %v507_v60, %v1919_v38 }
  0xc4   :  { %v505_v28 = vpop.permute.xlu1 %504  ;;  %v503_v29 = vpop.permute.xlu0 %502  ;;  %v1505_v20 = vpack.i.bf16 %v516_v7, %v150_v14 }
  0xc5   :  { %v519_v30 = vmul.f32 0.0, %v505_v28  ;;  %v508_v10 = vsel %vm506_vm4, %v501_v21, %v503_v29  ;;  %v509_v11 = vsel %vm506_vm4, %v503_v29, %v505_v28 }
  0xc6   :  { %v517_v18 = vmul.f32 %v508_v10, %v1908_v25  ;;  %v518_v19 = vmul.f32 %v509_v11, %v1910_v26 }
  0xc7   :  { %v1480_v33 = vpack.i.bf16 %v515_v24, %v519_v30 }
  0xc8   :  { %v645_v35 = vpop.permute.xlu1 %644  ;;  %v643_v36 = vpop.permute.xlu0 %642  ;;  %v1510_v28 = vpack.i.bf16 %v518_v19, %v517_v18 }
  0xc9   :  { %1481 = vrot.lane.b32.xlu1 %v1480_v33, %s1717_s2  ;;  %v651_v22 = vsel %vm650_vm2, %v643_v36, %v645_v35  ;;  %v659_v24 = vmul.f32 0.0, %v643_v36 }
  0xca   :  { %v660_v27 = vmul.f32 0.0, %v651_v22 }
  0xcc   :  { %v649_v44 = vpop.permute.xlu1 %648  ;;  %v647_v45 = vpop.permute.xlu0 %646 }
  0xcd   :  { %v663_v47 = vmul.f32 %v649_v44, %v1908_v25  ;;  %v652_v48 = vsel %vm650_vm2, %v645_v35, %v647_v45  ;;  %v653_v49 = vsel %vm650_vm2, %v647_v45, %v649_v44  ;;  %1491 = vrot.lane.b32.xlu1 %v1490_v42, %s1717_s2  ;;  %v1515_v35 = vpack.i.bf16 %v660_v27, %v659_v24  ;;  %v1156_v27 = vld [vmem:[#allocation8 + $0x27] ss:$8 sm:$0xf] }
  0xce   :  { %v661_v51 = vmul.f32 %v652_v48, %v1905_v23  ;;  %v662_v52 = vmul.f32 %v653_v49, %v1919_v38  ;;  %v880_v44 = vrot.slane %v871_v39, %v1808_v5  ;;  %v876_v45 = vrot.slane %v871_v39, %v1802_v3 }
  0xcf   :  { %677 = vrot.lane.b32.xlu0 %v663_v47, %s1729_s1  ;;  %v888_v49 = vrot.slane %v871_v39, %v1805_v4 }
  0xd0   :  { %v789_v55 = vpop.permute.xlu1 %788  ;;  %v787_v56 = vpop.permute.xlu0 %786  ;;  %v1520_v62 = vpack.i.bf16 %v662_v52, %v661_v51  ;;  %v1015_v51 = vld [vmem:[#allocation8 + $0x25] ss:$8 sm:$0xf] }
  0xd1   :  { %v795_v58 = vsel %vm794_vm3, %v787_v56, %v789_v55  ;;  %1501 = vrot.lane.b32.xlu1 %v1500_v53, %s1728_s6  ;;  %v803_v37 = vmul.f32 0.0, %v787_v56  ;;  %v1024_v56 = vrot.slane %v1015_v51, %v1808_v5  ;;  %v1020_v57 = vrot.slane %v1015_v51, %v1802_v3 }
  0xd2   :  { %v804_v63 = vmul.f32 0.0, %v795_v58 }
  0xd3   :  { %1486 = vrot.lane.b32.xlu0 %v1485_v59, %s1717_s2 }
  0xd4   :  { %v793_v0 = vpop.permute.xlu1 %792  ;;  %v791_v6 = vpop.permute.xlu0 %790 }
  0xd5   :  { %v796_v8 = vsel %vm794_vm3, %v789_v55, %v791_v6  ;;  %1521 = vrot.lane.b32.xlu1 %v1520_v62, %s1729_s1  ;;  %v797_v29 = vsel %vm794_vm3, %v791_v6, %v793_v0  ;;  %v807_v32 = vmul.f32 %v793_v0, %v1908_v25  ;;  %v1032_v0 = vrot.slane %v1015_v51, %v1805_v4 }
  0xd6   :  { %v805_v12 = vmul.f32 %v796_v8, %v1905_v23  ;;  %v806_v33 = vmul.f32 %v797_v29, %v1919_v38  ;;  %v1028_v6 = vrot.slane %v1015_v51, %v1799_v2 }
  0xd7   :  { %1496 = vrot.lane.b32.xlu0 %v1495_v9, %s1728_s6 }
  0xd8   :  { %v933_v15 = vpop.permute.xlu1 %932  ;;  %v1949_v16 = vpop.permute.xlu0 %930  ;;  %v1525_v17 = vpack.i.bf16 %v805_v12, %v804_v63  ;;  %v1530_v43 = vpack.i.bf16 %v807_v32, %v806_v33 }
  0xd9   :  { %v939_v60 = vsel %vm938_vm7, %v1949_v16, %v933_v15  ;;  %v947_v7 = vmul.f32 %v1949_v16, %v1905_v23 }
  0xda   :  { %1526 = vrot.lane.b32.xlu1 %v1525_v17, %s1730_s7  ;;  %v948_v8 = vmul.f32 %v939_v60, %v1919_v38 }
  0xdb   :  { %1506 = vrot.lane.b32.xlu0 %v1505_v20, %s1717_s2 }
  0xdc   :  { %v1956_v21 = vpop.permute.xlu1 %936  ;;  %v935_v13 = vpop.permute.xlu0 %934  ;;  %v1540_v24 = vpack.i.bf16 %v948_v8, %v947_v7 }
  0xdd   :  { %v940_v61 = vsel %vm938_vm7, %v933_v15, %v935_v13  ;;  %v941_v62 = vsel %vm938_vm7, %v935_v13, %v1956_v21  ;;  %v951_v32 = vmul.f32 0.0, %v1956_v21  ;;  %v1169_v21 = vrot.slane %v1156_v27, %v1799_v2 }
  0xde   :  { %v949_v9 = vmul.f32 %v940_v61, %v1908_v25  ;;  %v950_v10 = vmul.f32 %v941_v62, %v1910_v26 }
  0xdf   :  { %1511 = vrot.lane.b32.xlu0 %v1510_v28, %s1717_s2 }
  0xe0   :  { %v1076_v30 = vpop.permute.xlu1 %1075  ;;  %v1960_v31 = vpop.permute.xlu0 %1073  ;;  %v1545_v20 = vpack.i.bf16 %v950_v10, %v949_v9 }
  0xe1   :  { %v1081_v34 = vsel %vm753_vm5, %v1960_v31, %v1076_v30  ;;  %v1089_v33 = vmul.f32 %v1960_v31, %v1919_v38 }
  0xe2   :  { %v1090_v36 = vmul.f32 %v1081_v34, %v1908_v25 }
  0xe3   :  { %1516 = vrot.lane.b32.xlu0 %v1515_v35, %s1729_s1  ;;  %v1161_v35 = vrot.slane %v1156_v27, %v1802_v3  ;;  %v1165_v3 = vrot.slane %v1156_v27, %v1808_v5  ;;  %v1173_v5 = vrot.slane %v1156_v27, %v1805_v4 }
  0xe4   :  { %v1968_v40 = vpop.permute.xlu1 %1079  ;;  %v1078_v41 = vpop.permute.xlu0 %1077  ;;  %v1535_v42 = vpack.i.bf16 %v1090_v36, %v803_v37 }
  0xe5   :  { %v1082_v14 = vsel %vm753_vm5, %v1076_v30, %v1078_v41  ;;  %v1083_v15 = vsel %vm753_vm5, %v1078_v41, %v1968_v40  ;;  %v1093_v34 = vmul.f32 0.0, %v1968_v40 }
  0xe6   :  { %1536 = vrot.lane.b32.xlu1 %v1535_v42, %s1730_s7  ;;  %v1091_v18 = vmul.f32 %v1082_v14, %v1910_v26  ;;  %v1092_v19 = vmul.f32 0.0, %v1083_v15 }
  0xe7   :  { %1531 = vrot.lane.b32.xlu0 %v1530_v43, %s1730_s7  ;;  %v1555_v42 = vpack.i.bf16 %v1089_v33, %v1093_v34 }
  0xe8   :  { %v95_v46 = vpop.permute.xlu1 %94  ;;  %v1974_v47 = vpop.permute.xlu0 %92  ;;  %v1550_v28 = vpack.i.bf16 %v1092_v19, %v1091_v18 }
  0xe9   :  { %v1978_v48 = vsel %vm100_vm6, %v1974_v47, %v95_v46 }
  0xea   :  { %891 = vrot.lane.b32.xlu1 %v880_v44, %s1730_s7 }
  0xeb   :  { %889 = vrot.lane.b32.xlu0 %v876_v45, %s1730_s7 }
  0xec   :  { %v1984_v52 = vpop.permute.xlu1 %98  ;;  %v97_v53 = vpop.permute.xlu0 %96 }
  0xed   :  { %v1987_v54 = vsel %vm100_vm6, %v95_v46, %v97_v53  ;;  %v1991_v55 = vsel %vm100_vm6, %v97_v53, %v1984_v52 }
  0xee   :  { %895 = vrot.lane.b32.xlu1 %v888_v49, %s1730_s7 }
  0xef   :  { %893 = vrot.lane.b32.xlu0 %v884_v50, %s1730_s7 }
  0xf0   :  { %v240_v58 = vpop.permute.xlu1 %239  ;;  %v1997_v59 = vpop.permute.xlu0 %237 }
  0xf1   :  { %v2006_v63 = vsel %vm245_vm8, %v1997_v59, %v240_v58 }
  0xf2   :  { %1035 = vrot.lane.b32.xlu1 %v1024_v56, %s1719_s24 }
  0xf3   :  { %1033 = vrot.lane.b32.xlu0 %v1020_v57, %s1719_s24 }
  0xf4   :  { %v2017_v11 = vpop.permute.xlu1 %243  ;;  %v242_v12 = vpop.permute.xlu0 %241 }
  0xf5   :  { %v2023_v17 = vsel %vm245_vm8, %v240_v58, %v242_v12  ;;  %v2027_v16 = vsel %vm245_vm8, %v242_v12, %v2017_v11 }
  0xf6   :  { %1039 = vrot.lane.b32.xlu1 %v1032_v0, %s1719_s24 }
  0xf7   :  { %1037 = vrot.lane.b32.xlu0 %v1028_v6, %s1719_s24 }
  0xf8   :  { %v384_v22 = vpop.permute.xlu1 %383  ;;  %v382_v13 = vpop.permute.xlu0 %381 }
  0xf9   :  { %v390_v37 = vsel %vm389_vm9, %v382_v13, %v384_v22  ;;  %v398_v57 = vmul.f32 %v382_v13, %v1905_v23 }
  0xfa   :  { %1546 = vrot.lane.b32.xlu1 %v1545_v20, %s1731_s8  ;;  %v399_v31 = vmul.f32 %v390_v37, %v1919_v38  ;;  %v113_v20 = vmul.f32 %v1984_v52, %v1910_v26  ;;  %v258_v52 = vmul.f32 %v2017_v11, %v1910_v26  ;;  %v111_v11 = vmul.f32 %v1987_v54, %v1919_v38 }
  0xfb   :  { %1541 = vrot.lane.b32.xlu0 %v1540_v24, %s1731_s8  ;;  %v112_v24 = vmul.f32 %v1991_v55, %v1908_v25  ;;  %v257_v55 = vmul.f32 %v2027_v16, %v1908_v25 }
  0xfc   :  { %v388_v29 = vpop.permute.xlu1 %387  ;;  %v386_v30 = vpop.permute.xlu0 %385 }
  0xfd   :  { %v391_v36 = vsel %vm389_vm9, %v384_v22, %v386_v30  ;;  %v392_v43 = vsel %vm389_vm9, %v386_v30, %v388_v29  ;;  %v402_v49 = vmul.f32 0.0, %v388_v29 }
  0xfe   :  { %1551 = vrot.lane.b32.xlu1 %v1550_v28, %s1730_s7  ;;  %v400_v40 = vmul.f32 %v391_v36, %v1908_v25  ;;  %v401_v50 = vmul.f32 %v392_v43, %v1910_v26 }
  0xff   :  { %965 = vrot.lane.b32.xlu0 %v951_v32, %s1731_s8 }
 0x100   :  { %v2040_v39 = vpop.permute.xlu1 %460  ;;  %v2042_v41 = vpop.permute.xlu0 %458  ;;  %v1560_v2 = vpack.i.bf16 %v400_v40, %v399_v31  ;;  %v1565_v58 = vpack.i.bf16 %v402_v49, %v401_v50  ;;  %v110_v40 = vmul.f32 %v1978_v48, %v1905_v23 }
 0x102   :  { %1174 = vrot.lane.b32.xlu1 %v1161_v35, %s1720_s25 }
 0x103   :  { %1556 = vrot.lane.b32.xlu0 %v1555_v42, %s1730_s7 }
 0x104   :  { %v465_v44 = vpop.permute.xlu1 %464  ;;  %v2051_v45 = vpop.permute.xlu0 %462 }
 0x105   :  { %v2055_v46 = vsel %vm344_vm10, %v2051_v45, %v465_v44  ;;  %v478_v14 = vmul.f32 0.0, %v465_v44 }
 0x106   :  { %1178 = vrot.lane.b32.xlu1 %v1169_v21, %s1720_s25 }
 0x107   :  { %1176 = vrot.lane.b32.xlu0 %v1165_v3, %s1720_s25 }
 0x108   :  { %v603_v51 = vpop.permute.xlu1 %602  ;;  %v2061_v53 = vpop.permute.xlu0 %600 }
 0x109   :  { %v2065_v56 = vsel %vm200_vm11, %v2061_v53, %v603_v51 }
 0x10a   :  { %1561 = vrot.lane.b32.xlu1 %v1560_v2, %s1717_s2 }
 0x10b   :  { %1180 = vrot.lane.b32.xlu0 %v1173_v5, %s1720_s25 }
 0x10c   :  { %v2070_v60 = vpop.permute.xlu1 %606  ;;  %v2072_v61 = vpop.permute.xlu0 %604 }
 0x10d   :  { %v2076_v4 = vsel %vm200_vm11, %v603_v51, %v2072_v61  ;;  %v254_v51 = vmul.f32 0.0, %v1997_v59 }
 0x10e   :  { %408 = vrot.lane.b32.xlu1 %v398_v57, %s1717_s2  ;;  %v255_v57 = vmul.f32 %v2006_v63, %v1905_v23 }
 0x10f   :  { %1566 = vrot.lane.b32.xlu0 %v1565_v58, %s1717_s2 }
 0x110   :  { %v748_v62 = vpop.permute.xlu1 %747  ;;  %v2080_v0 = vpop.permute.xlu0 %745 }
 0x111   :  { %v754_v6 = vsel %vm753_vm5, %v2080_v0, %v748_v62 }
 0x114   :  { %v2084_v7 = vpop.permute.xlu0 %749  ;;  %v2090_v9 = vpop.permute.xlu1 %751 }
 0x115   :  { %v2088_v8 = vsel %vm753_vm5, %v748_v62, %v2084_v7  ;;  %v256_v62 = vmul.f32 %v2023_v17, %v1919_v38  ;;  %v763_v17 = vmul.f32 0.0, %v754_v6 }
 0x12d   :  { %v305_v10 = vpop.permute.xlu1 %304 }
 0x13b   :  { %v2093_v12 = vpop.permute.xlu1 %1481 }
 0x13c   :  { %v1483_v15 = vunpack.i.l.bf16 %v2093_v12 }
 0x13e   :  { %v2100_v18 = vsel %vm68_vm12, %v478_v14, %v1483_v15 }
 0x13f   :  { %v1492_v19 = vpop.permute.xlu1 %1491 }
 0x140   :  { %v1494_v22 = vunpack.i.h.bf16 %v1492_v19  ;;  %v1493_v13 = vunpack.i.l.bf16 %v1492_v19 }
 0x141   :  { %v2106_v27 = vpop.permute.xlu0 %677 }
 0x142   :  { %v174_v28 = vsel %vm170_vm1, %v1493_v13, %v1494_v22  ;;  %v184_v29 = vsel %vm68_vm12, %v113_v20, %v1494_v22 }
 0x143   :  { %v1502_v30 = vpop.permute.xlu1 %1501  ;;  %v183_v32 = vsel %vm68_vm12, %v112_v24, %v174_v28 }
 0x144   :  { %v1504_v33 = vunpack.i.h.bf16 %v1502_v30  ;;  %v1503_v34 = vunpack.i.l.bf16 %v1502_v30  ;;  %v1575_v35 = vpack.i.bf16 %v184_v29, %v183_v32  ;;  %v466_v32 = vsel %vm344_vm10, %v2042_v41, %v2040_v39 }
 0x145   :  { %v1487_v37 = vpop.permute.xlu0 %1486 }
 0x146   :  { %v318_v36 = vsel %vm314_vm13, %v1503_v34, %v1504_v33  ;;  %v1489_v42 = vunpack.i.h.bf16 %v1487_v37  ;;  %v1488_v21 = vunpack.i.l.bf16 %v1487_v37  ;;  %1576 = vrot.lane.b32.xlu0 %v1575_v35, %s1727_s5  ;;  %v328_v31 = vsel %vm68_vm12, %v258_v52, %v1504_v33 }
 0x147   :  { %v2125_v3 = vpop.permute.xlu1 %1521  ;;  %v327_v16 = vsel %vm68_vm12, %v257_v55, %v318_v36  ;;  %v467_v33 = vsel %vm344_vm10, %v2040_v39, %v2051_v45  ;;  %v475_v37 = vmul.f32 %v466_v32, %v1919_v38  ;;  %v477_v39 = vmul.f32 %v2055_v46, %v1910_v26 }
 0x148   :  { %v173_v43 = vsel %vm170_vm1, %v1489_v42, %v1493_v13  ;;  %v172_v44 = vsel %vm170_vm1, %v1488_v21, %v1489_v42  ;;  %v1585_v49 = vpack.i.bf16 %v328_v31, %v327_v16  ;;  %v610_v45 = vsel %vm200_vm11, %v2072_v61, %v2070_v60 }
 0x149   :  { %v1497_v2 = vpop.permute.xlu0 %1496  ;;  %v2133_v50 = vsel %vm68_vm12, %v110_v40, %v172_v44  ;;  %v2137_v48 = vsel %vm68_vm12, %v111_v11, %v173_v43  ;;  %v476_v40 = vmul.f32 %v467_v33, %v1908_v25  ;;  %v1523_v11 = vunpack.i.l.bf16 %v2125_v3 }
 0x14a   :  { %v1499_v54 = vunpack.i.h.bf16 %v1497_v2  ;;  %v1498_v5 = vunpack.i.l.bf16 %v1497_v2  ;;  %1586 = vrot.lane.b32.xlu0 %v1585_v49, %s1726_s4  ;;  %v1570_v58 = vpack.i.bf16 %v2137_v48, %v2133_v50  ;;  %v1484_v2 = vunpack.i.h.bf16 %v2093_v12 }
 0x14b   :  { %v764_v33 = vmul.f32 %v2088_v8, %v1905_v23  ;;  %v766_v8 = vmul.f32 %v2090_v9, %v1908_v25 }
 0x14c   :  { %v317_v14 = vsel %vm314_vm13, %v1499_v54, %v1503_v34  ;;  %v316_v19 = vsel %vm314_vm13, %v1498_v5, %v1499_v54  ;;  %v2149_v20 = vpop.permute.xlu1 %1526  ;;  %v315_v59 = vsel %vm314_vm13, %v305_v10, %v1498_v5  ;;  %v109_v10 = vmul.f32 0.0, %v1974_v47 }
 0x14d   :  { %v1529_v22 = vunpack.i.h.bf16 %v2149_v20  ;;  %v1528_v63 = vunpack.i.l.bf16 %v2149_v20  ;;  %v1507_v13 = vpop.permute.xlu0 %1506  ;;  %v324_v24 = vsel %vm68_vm12, %v254_v51, %v315_v59  ;;  %v2158_v28 = vsel %vm68_vm12, %v255_v57, %v316_v19 }
 0x14e   :  { %v1508_v29 = vunpack.i.l.bf16 %v1507_v13  ;;  %v2162_v30 = vsel %vm68_vm12, %v256_v62, %v317_v14  ;;  %334 = vrot.lane.b32.xlu0 %v324_v24, %s1726_s4  ;;  %v1509_v36 = vunpack.i.h.bf16 %v1507_v13  ;;  %v474_v51 = vmul.f32 %v2042_v41, %v1905_v23 }
 0x14f   :  { %v825_v52 = vsel %vm823_vm14, %v1528_v63, %v1529_v22  ;;  %v1580_v6 = vpack.i.bf16 %v2162_v30, %v2158_v28  ;;  %v617_v57 = vmul.f32 %v2065_v56, %v1919_v38  ;;  %v618_v62 = vmul.f32 %v2076_v4, %v1908_v25 }
 0x150   :  { %v171_v47 = vsel %vm170_vm1, %v1508_v29, %v1488_v21  ;;  %v2182_v34 = vsel %vm68_vm12, %v763_v17, %v825_v52  ;;  %v1524_v21 = vunpack.i.h.bf16 %v2125_v3  ;;  %v535_v41 = vsel %vm170_vm1, %v1484_v2, %v1509_v36 }
 0x151   :  { %v1512_v35 = vpop.permute.xlu0 %1511  ;;  %v2186_v55 = vsel %vm68_vm12, %v109_v10, %v171_v47  ;;  %v620_v56 = vmul.f32 0.0, %v2070_v60  ;;  %v619_v4 = vmul.f32 %v610_v45, %v1910_v26  ;;  %v756_v10 = vsel %vm753_vm5, %v2084_v7, %v2090_v9 }
 0x152   :  { %v1514_v42 = vunpack.i.h.bf16 %v1512_v35  ;;  %v1513_v31 = vunpack.i.l.bf16 %v1512_v35  ;;  %v683_v14 = vsel %vm679_vm15, %v1524_v21, %v2106_v27  ;;  %v682_v19 = vsel %vm679_vm15, %v1523_v11, %v1524_v21 }
 0x153   :  { %v544_v47 = vsel %vm68_vm12, %v474_v51, %v535_v41  ;;  %v692_v35 = vsel %vm68_vm12, %v619_v4, %v682_v19 }
 0x154   :  { %v538_v16 = vsel %vm170_vm1, %v1514_v42, %v1483_v15  ;;  %v536_v43 = vsel %vm170_vm1, %v1509_v36, %v1513_v31  ;;  %v537_v44 = vsel %vm170_vm1, %v1513_v31, %v1514_v42  ;;  %v765_v31 = vmul.f32 %v756_v10, %v1919_v38 }
 0x155   :  { %v2203_v49 = vpop.permute.xlu0 %1516  ;;  %v545_v46 = vsel %vm68_vm12, %v475_v37, %v536_v43  ;;  %v546_v61 = vsel %vm68_vm12, %v476_v40, %v537_v44  ;;  %v2211_v3 = vsel %vm68_vm12, %v477_v39, %v538_v16  ;;  %v693_v37 = vsel %vm68_vm12, %v620_v56, %v683_v14 }
 0x156   :  { %v1519_v15 = vunpack.i.h.bf16 %v2203_v49  ;;  %v1518_v54 = vunpack.i.l.bf16 %v2203_v49  ;;  %v1590_v5 = vpack.i.bf16 %v546_v61, %v545_v46  ;;  %v1595_v12 = vpack.i.bf16 %v2100_v18, %v2211_v3 }
 0x157   :  { %v1605_v45 = vpack.i.bf16 %v693_v37, %v692_v35  ;;  %v762_v61 = vmul.f32 0.0, %v2080_v0 }
 0x158   :  { %v681_v59 = vsel %vm679_vm15, %v1519_v15, %v1523_v11  ;;  %v680_v13 = vsel %vm679_vm15, %v1518_v54, %v1519_v15  ;;  %v2230_v24 = vpop.permute.xlu1 %1536  ;;  %1591 = vrot.lane.b32.xlu0 %v1590_v5, %s1724_s29 }
 0x159   :  { %v1532_v17 = vpop.permute.xlu0 %1531  ;;  %v2238_v27 = vsel %vm68_vm12, %v617_v57, %v680_v13  ;;  %v2242_v29 = vsel %vm68_vm12, %v618_v62, %v681_v59  ;;  %v1538_v9 = vunpack.i.l.bf16 %v2230_v24 }
 0x15a   :  { %v1534_v32 = vunpack.i.h.bf16 %v1532_v17  ;;  %v1533_v52 = vunpack.i.l.bf16 %v1532_v17  ;;  %v1600_v60 = vpack.i.bf16 %v2242_v29, %v2238_v27 }
 0x15b   :  { %v824_v46 = vsel %vm823_vm14, %v1538_v9, %v1528_v63 }
 0x15c   :  { %v827_v36 = vsel %vm823_vm14, %v1533_v52, %v1534_v32  ;;  %v826_v7 = vsel %vm823_vm14, %v1529_v22, %v1533_v52  ;;  %v2261_v42 = vpop.permute.xlu1 %891  ;;  %554 = vrot.lane.b32.xlu0 %v544_v47, %s1724_s29  ;;  %v837_v22 = vsel %vm68_vm12, %v766_v8, %v1534_v32  ;;  %v833_v5 = vsel %vm68_vm12, %v762_v61, %v824_v46 }
 0x15d   :  { %v2267_v40 = vpop.permute.xlu0 %889  ;;  %v2271_v39 = vsel %vm68_vm12, %v764_v33, %v826_v7  ;;  %v836_v11 = vsel %vm68_vm12, %v765_v31, %v827_v36 }
 0x15e   :  { %v1610_v21 = vpack.i.bf16 %v2271_v39, %v2182_v34  ;;  %v1615_v44 = vpack.i.bf16 %v837_v22, %v836_v11  ;;  %v897_v50 = vsel %vm823_vm14, %v2267_v40, %v2261_v42 }
 0x15f   :  { %v906_v18 = vmul.f32 %v897_v50, %v1905_v23 }
 0x160   :  { %v896_v16 = vpop.permute.xlu1 %895  ;;  %1606 = vrot.lane.b32.xlu0 %v1605_v45, %s1723_s28 }
 0x161   :  { %v2281_v43 = vpop.permute.xlu0 %893  ;;  %v909_v13 = vmul.f32 %v896_v16, %v1910_v26 }
 0x162   :  { %v899_v0 = vsel %vm823_vm14, %v2281_v43, %v896_v16  ;;  %v1539_v16 = vunpack.i.h.bf16 %v2230_v24  ;;  %v616_v24 = vmul.f32 %v2061_v53, %v1905_v23  ;;  %v905_v53 = vmul.f32 0.0, %v2267_v40 }
 0x163   :  { %v908_v41 = vmul.f32 %v899_v0, %v1908_v25  ;;  %v898_v48 = vsel %vm823_vm14, %v2261_v42, %v2281_v43 }
 0x164   :  { %v2283_v2 = vpop.permute.xlu1 %1035  ;;  %1616 = vrot.lane.b32.xlu0 %v1615_v44, %s1722_s27 }
 0x165   :  { %v2290_v15 = vpop.permute.xlu0 %1033 }
 0x168   :  { %v1040_v51 = vpop.permute.xlu1 %1039  ;;  %843 = vrot.lane.b32.xlu0 %v833_v5, %s1722_s27 }
 0x169   :  { %v2295_v57 = vpop.permute.xlu0 %1037  ;;  %v1053_v35 = vmul.f32 0.0, %v1040_v51 }
 0x16a   :  { %v1043_v32 = vsel %vm650_vm2, %v2295_v57, %v1040_v51  ;;  %v1042_v3 = vsel %vm650_vm2, %v2283_v2, %v2295_v57 }
 0x16b   :  { %v1052_v7 = vmul.f32 0.0, %v1043_v32  ;;  %v1051_v42 = vmul.f32 %v1042_v3, %v1910_v26 }
 0x16c   :  { %v2297_v62 = vpop.permute.xlu1 %1546 }
 0x16d   :  { %v1549_v14 = vunpack.i.h.bf16 %v2297_v62  ;;  %v1548_v20 = vunpack.i.l.bf16 %v2297_v62  ;;  %v2301_v19 = vpop.permute.xlu0 %1541  ;;  %v1732_v62 = vmov 0.0  }
 0x16e   :  { %v1544_v49 = vunpack.i.h.bf16 %v2301_v19  ;;  %1403 = vmatprep.mubr.f32.mxu1 %v1732_v62  ;;  %1332 = vmatprep.mubr.f32.mxu0 %v1732_v62 }
 0x16f   :  { %v970_v59 = vsel %vm967_vm0, %v1548_v20, %v1549_v14 }
 0x170   :  { %v2305_v63 = vpop.permute.xlu1 %1551  ;;  %v980_v17 = vsel %vm68_vm12, %v908_v41, %v970_v59  ;;  %v969_v30 = vsel %vm967_vm0, %v1544_v49, %v1548_v20 }
 0x171   :  { %v966_v56 = vpop.permute.xlu0 %965  ;;  %v1554_v37 = vunpack.i.h.bf16 %v2305_v63 }
 0x172   :  { %v971_v4 = vsel %vm967_vm0, %v1549_v14, %v966_v56  ;;  %v1049_v14 = vmul.f32 %v2290_v15, %v1919_v38  ;;  %v1543_v56 = vunpack.i.l.bf16 %v2301_v19 }
 0x173   :  { %v981_v10 = vsel %vm68_vm12, %v909_v13, %v971_v4  ;;  %v689_v4 = vsel %vm68_vm12, %v616_v24, %v1518_v54 }
 0x174   :  { %v1625_v52 = vpack.i.bf16 %v981_v10, %v980_v17  ;;  %v2319_v33 = vpop.permute.xlu1 %1174  ;;  %v977_v32 = vsel %vm68_vm12, %v905_v53, %v1543_v56  ;;  %v968_v28 = vsel %vm967_vm0, %v1543_v56, %v1544_v49 }
 0x175   :  { %v1557_v47 = vpop.permute.xlu0 %1556  ;;  %v978_v54 = vsel %vm68_vm12, %v906_v18, %v968_v28 }
 0x176   :  { %v1558_v36 = vunpack.i.l.bf16 %v1557_v47  ;;  %1626 = vrot.lane.b32.xlu0 %v1625_v52, %s1721_s26  ;;  %v1559_v8 = vunpack.i.h.bf16 %v1557_v47 }
 0x178   :  { %v1112_v31 = vsel %vm823_vm14, %v1554_v37, %v1558_v36  ;;  %v1122_v45 = vsel %vm68_vm12, %v1053_v35, %v1558_v36  ;;  %v1179_v11 = vpop.permute.xlu1 %1178  ;;  %v1109_v51 = vsel %vm823_vm14, %v1559_v8, %v1539_v16 }
 0x179   :  { %v1121_v22 = vsel %vm68_vm12, %v1052_v7, %v1112_v31  ;;  %v1177_v9 = vpop.permute.xlu0 %1176  ;;  %v1118_v13 = vsel %vm68_vm12, %v1049_v14, %v1109_v51 }
 0x17a   :  { %v1635_v44 = vpack.i.bf16 %v1122_v45, %v1121_v22  ;;  %v1182_v46 = vsel %vm794_vm3, %v2319_v33, %v1177_v9  ;;  %v1183_v5 = vsel %vm794_vm3, %v1177_v9, %v1179_v11 }
 0x17b   :  { %v1191_v61 = vmul.f32 %v1182_v46, %v1908_v25  ;;  %v1192_v59 = vmul.f32 %v1183_v5, %v1910_v26 }
 0x17c   :  { %1636 = vrot.lane.b32.xlu0 %v1635_v44, %s1720_s25 }
 0x17d   :  { %v1196_v0 = vsel %vm68_vm12, %v1191_v61, 1.0  ;;  %v1181_v41 = vpop.permute.xlu0 %1180  ;;  %v1197_v10 = vsel %vm68_vm12, %v1192_v59, 1.0 }
 0x17e   :  { %1207 = vrot.lane.b32.xlu1 %v1196_v0, %s1719_s24  ;;  %v1194_v17 = vmul.f32 0.0, %v1181_v41  ;;  %v1184_v40 = vsel %vm794_vm3, %v1179_v11, %v1181_v41 }
 0x17f   :  { %v1193_v57 = vmul.f32 0.0, %v1184_v40 }
 0x180   :  { %1128 = vrot.lane.b32.xlu0 %v1118_v13, %s1720_s25  ;;  %v1199_v52 = vsel %vm68_vm12, %v1194_v17, 1.0 }
 0x181   :  { %v1198_v39 = vsel %vm68_vm12, %v1193_v57, 1.0  ;;  %v1567_v19 = vpop.permute.xlu0 %1566 }
 0x182   :  { %699 = vrot.lane.b32.xlu1 %v689_v4, %s1723_s28  ;;  %v1568_v28 = vunpack.i.l.bf16 %v1567_v19 }
 0x184   :  { %1209 = vrot.lane.b32.xlu0 %v1197_v10, %s1719_s24 }
 0x186   :  { %987 = vrot.lane.b32.xlu1 %v977_v32, %s1721_s26  ;;  %v1569_v32 = vunpack.i.h.bf16 %v1567_v19 }
 0x188   :  { %1213 = vrot.lane.b32.xlu0 %v1199_v52, %s1719_s24  ;;  %v421_v57 = vsel %vm170_vm1, %v1568_v28, %v1569_v32 }
 0x18a   :  { %1571 = vrot.lane.b32.xlu1 %v1570_v58, %s1727_s5  ;;  %v1553_v58 = vunpack.i.l.bf16 %v2305_v63 }
 0x18c   :  { %v1110_v27 = vsel %vm823_vm14, %v1539_v16, %v1553_v58  ;;  %v1111_v29 = vsel %vm823_vm14, %v1553_v58, %v1554_v37 }
 0x18e   :  { %1581 = vrot.lane.b32.xlu1 %v1580_v6, %s1726_s4  ;;  %v907_v6 = vmul.f32 %v898_v48, %v1919_v38 }
 0x192   :  { %190 = vrot.lane.b32.xlu1 %v2186_v55, %s1727_s5  ;;  %v1041_v55 = vsel %vm650_vm2, %v2290_v15, %v2283_v2  ;;  %v1120_v15 = vsel %vm68_vm12, %v1051_v42, %v1111_v29 }
 0x196   :  { %1596 = vrot.lane.b32.xlu1 %v1595_v12, %s1724_s29  ;;  %v979_v12 = vsel %vm68_vm12, %v907_v6, %v969_v30 }
 0x197   :  { %v1620_v43 = vpack.i.bf16 %v979_v12, %v978_v54 }
 0x19a   :  { %1601 = vrot.lane.b32.xlu1 %v1600_v60, %s1723_s28  ;;  %v1050_v60 = vmul.f32 %v1041_v55, %v1908_v25 }
 0x19c   :  { %v1119_v2 = vsel %vm68_vm12, %v1050_v60, %v1110_v27 }
 0x19d   :  { %v1630_v34 = vpack.i.bf16 %v1120_v15, %v1119_v2 }
 0x19e   :  { %1611 = vrot.lane.b32.xlu1 %v1610_v21, %s1722_s27  ;;  %v1190_v21 = vmul.f32 %v2319_v33, %v1919_v38  ;;  %v1562_v33 = vpop.permute.xlu1 %1561 }
 0x19f   :  { %v1564_v0 = vunpack.i.h.bf16 %v1562_v33  ;;  %v1563_v13 = vunpack.i.l.bf16 %v1562_v33 }
 0x1a0   :  { %v1195_v20 = vsel %vm68_vm12, %v1190_v21, 1.0 }
 0x1a1   :  { %v419_v10 = vsel %vm170_vm1, %v1563_v13, %v1564_v0  ;;  %v420_v15 = vsel %vm170_vm1, %v1564_v0, %v1568_v28 }
 0x1a2   :  { %1621 = vrot.lane.b32.xlu1 %v1620_v43, %s1721_s26  ;;  %v409_v9 = vpop.permute.xlu1 %408  ;;  %v427_v12 = vsel %vm68_vm12, %v1919_v38, %v419_v10 }
 0x1a3   :  { %v418_v27 = vsel %vm170_vm1, %v409_v9, %v1563_v13  ;;  %vm1264_vm1 = vcmask 588800  }
 0x1a6   :  { %1631 = vrot.lane.b32.xlu1 %v1630_v34, %s1720_s25 }
 0x1aa   :  { %1211 = vrot.lane.b32.xlu1 %v1198_v39, %s1719_s24  ;;  %v426_v39 = vsel %vm68_vm12, %v1905_v23, %v418_v27 }
 0x1ae   :  { %1205 = vrot.lane.b32.xlu1 %v1195_v20, %s1719_s24 }
 0x1b8   :  { %v1577_v63 = vpop.permute.xlu0 %1576 }
 0x1b9   :  { %v1579_v47 = vunpack.i.h.bf16 %v1577_v63  ;;  %v1578_v35 = vunpack.i.l.bf16 %v1577_v63 }
 0x1bb   :  { %v204_v8 = vsel %vm200_vm11, %v1578_v35, %v1579_v47 }
 0x1bc   :  { %v1587_v37 = vpop.permute.xlu0 %1586 }
 0x1bd   :  { %v1589_v36 = vunpack.i.h.bf16 %v1587_v37  ;;  %v1588_v7 = vunpack.i.l.bf16 %v1587_v37 }
 0x1bf   :  { %v348_v31 = vsel %vm344_vm10, %v1588_v7, %v1589_v36  ;;  %v428_v36 = vsel %vm68_vm12, %v1908_v25, %v420_v15 }
 0x1c0   :  { %v1441_v45 = vpack.c.bf16 %v348_v31, %v204_v8  ;;  %v335_v22 = vpop.permute.xlu0 %334 }
 0x1c2   :  { %1442 = vmatprep.subr.bf16.mxu1 %v1441_v45 }
 0x1ca   :  { %v1592_v11 = vpop.permute.xlu0 %1591 }
 0x1cb   :  { %v1594_v41 = vunpack.i.h.bf16 %v1592_v11  ;;  %v1593_v56 = vunpack.i.l.bf16 %v1592_v11 }
 0x1cd   :  { %v565_v55 = vsel %vm245_vm8, %v1593_v56, %v1594_v41 }
 0x1ce   :  { %v555_v16 = vpop.permute.xlu0 %554  ;;  %v1429_v2 = vpack.c.bf16 %v565_v55, %v427_v12 }
 0x1cf   :  { %v564_v43 = vsel %vm245_vm8, %v555_v16, %v1593_v56 }
 0x1d0   :  { %v1431_v19 = vpack.c.bf16 %v564_v43, %v426_v39 }
 0x1d2   :  { %v2433_v61 = vpop.permute.xlu0 %1606 }
 0x1d3   :  { %v1609_v38 = vunpack.i.h.bf16 %v2433_v61  ;;  %v1608_v62 = vunpack.i.l.bf16 %v2433_v61 }
 0x1d5   :  { %v712_v45 = vsel %vm100_vm6, %v1608_v62, %v1609_v38 }
 0x1d6   :  { %v2437_v51 = vpop.permute.xlu0 %1616 }
 0x1d7   :  { %v1619_v29 = vunpack.i.h.bf16 %v2437_v51  ;;  %v1618_v60 = vunpack.i.l.bf16 %v2437_v51 }
 0x1d9   :  { %v856_v47 = vsel %vm753_vm5, %v1618_v60, %v1619_v29 }
 0x1da   :  { %v2440_v52 = vpop.permute.xlu0 %843  ;;  %v1449_v33 = vpack.c.bf16 %v856_v47, %v712_v45 }
 0x1e8   :  { %v2455_v42 = vpop.permute.xlu0 %1626 }
 0x1e9   :  { %v1628_v1 = vunpack.i.l.bf16 %v2455_v42 }
 0x1ee   :  { %v1637_v63 = vpop.permute.xlu0 %1636 }
 0x1ef   :  { %v1638_v11 = vunpack.i.l.bf16 %v1637_v63 }
 0x1f0   :  { %v2429_v44 = vpop.permute.xlu1 %1207 }
 0x1f2   :  { %v1129_v25 = vpop.permute.xlu0 %1128 }
 0x1f4   :  { %v2431_v46 = vpop.permute.xlu1 %699 }
 0x1f8   :  { %v2435_v5 = vpop.permute.xlu1 %987 }
 0x1fc   :  { %v1572_v14 = vpop.permute.xlu1 %1571 }
 0x1fd   :  { %v1574_v24 = vunpack.i.h.bf16 %v1572_v14  ;;  %v1573_v59 = vunpack.i.l.bf16 %v1572_v14 }
 0x1ff   :  { %v202_v49 = vsel %vm200_vm11, %v1573_v59, %v1574_v24  ;;  %v203_v48 = vsel %vm200_vm11, %v1574_v24, %v1578_v35  ;;  %v429_v35 = vsel %vm68_vm12, %v1910_v26, %v421_v57  ;;  %v1629_v26 = vunpack.i.h.bf16 %v2455_v42  ;;  %v1227_v57 = vld [vmem:[#allocation6] sm:$0x1f] }
 0x200   :  { %v1582_v4 = vpop.permute.xlu1 %1581 }
 0x201   :  { %v1584_v17 = vunpack.i.h.bf16 %v1582_v4  ;;  %v1583_v53 = vunpack.i.l.bf16 %v1582_v4 }
 0x203   :  { %v346_v50 = vsel %vm344_vm10, %v1583_v53, %v1584_v17  ;;  %v347_v58 = vsel %vm344_vm10, %v1584_v17, %v1588_v7  ;;  %v345_v54 = vsel %vm344_vm10, %v335_v22, %v1583_v53  ;;  %v1639_v22 = vunpack.i.h.bf16 %v1637_v63 }
 0x204   :  { %v191_v30 = vpop.permute.xlu1 %190  ;;  %v1425_v18 = vpack.c.bf16 %v346_v50, %v202_v49  ;;  %v1443_v6 = vpack.c.bf16 %v347_v58, %v203_v48  ;;  %v1000_v49 = vsel %vm938_vm7, %v1628_v1, %v1629_v26  ;;  %v1210_v48 = vpop.permute.xlu0 %1209 }
 0x205   :  { %v201_v3 = vsel %vm200_vm11, %v191_v30, %v1573_v59  ;;  %v1141_v59 = vsel %vm794_vm3, %v1638_v11, %v1639_v22 }
 0x206   :  { %1426 = vmatprep.subr.bf16.mxu0 %v1425_v18  ;;  %1444 = vmatpush1.bf16.msra.mxu1 %v1443_v6  ;;  %v1427_v40 = vpack.c.bf16 %v345_v54, %v201_v3  ;;  %v1453_v50 = vpack.c.bf16 %v1141_v59, %v1000_v49 }
 0x208   :  { %v1597_v34 = vpop.permute.xlu1 %1596  ;;  %1428 = vmatpush1.bf16.msra.mxu0 %v1427_v40  ;;  %v1214_v6 = vpop.permute.xlu0 %1213 }
 0x209   :  { %v1599_v21 = vunpack.i.h.bf16 %v1597_v34  ;;  %v1598_v20 = vunpack.i.l.bf16 %v1597_v34  ;;  %1430 = vmatprep.subr.bf16.mxu0 %v1429_v2  ;;  %v1216_v2 = vsel %vm650_vm2, %v2429_v44, %v1210_v48 }
 0x20b   :  { %v567_v37 = vsel %vm245_vm8, %v1598_v20, %v1599_v21  ;;  %v566_v7 = vsel %vm245_vm8, %v1594_v41, %v1598_v20 }
 0x20c   :  { %v1602_v23 = vpop.permute.xlu1 %1601  ;;  %1432 = vmatpush1.bf16.msra.mxu0 %v1431_v19  ;;  %v1445_v8 = vpack.c.bf16 %v567_v37, %v429_v35  ;;  %v1447_v31 = vpack.c.bf16 %v566_v7, %v428_v36 }
 0x20d   :  { %v1604_v9 = vunpack.i.h.bf16 %v1602_v23  ;;  %v1603_v16 = vunpack.i.l.bf16 %v1602_v23 }
 0x20e   :  { %1446 = vmatprep.subr.bf16.mxu1 %v1445_v8 }
 0x20f   :  { %1448 = vmatpush1.bf16.msra.mxu1 %v1447_v31  ;;  %v710_v0 = vsel %vm100_vm6, %v1603_v16, %v1604_v9  ;;  %v711_v24 = vsel %vm100_vm6, %v1604_v9, %v1608_v62  ;;  %v709_v56 = vsel %vm100_vm6, %v2431_v46, %v1603_v16 }
 0x210   :  { %v1612_v61 = vpop.permute.xlu1 %1611  ;;  %1450 = vmatprep.subr.bf16.mxu1 %v1449_v33 }
 0x211   :  { %v1614_v51 = vunpack.i.h.bf16 %v1612_v61  ;;  %v1613_v14 = vunpack.i.l.bf16 %v1612_v61 }
 0x213   :  { %v854_v13 = vsel %vm753_vm5, %v1613_v14, %v1614_v51  ;;  %v855_v41 = vsel %vm753_vm5, %v1614_v51, %v1618_v60  ;;  %v853_v4 = vsel %vm753_vm5, %v2440_v52, %v1613_v14 }
 0x214   :  { %v1622_v17 = vpop.permute.xlu1 %1621  ;;  %v1433_v53 = vpack.c.bf16 %v854_v13, %v710_v0  ;;  %v1451_v10 = vpack.c.bf16 %v855_v41, %v711_v24  ;;  %v1435_v32 = vpack.c.bf16 %v853_v4, %v709_v56 }
 0x215   :  { %v1624_v58 = vunpack.i.h.bf16 %v1622_v17  ;;  %v1623_v28 = vunpack.i.l.bf16 %v1622_v17 }
 0x216   :  { %1434 = vmatprep.subr.bf16.mxu0 %v1433_v53  ;;  %1452 = vmatpush1.bf16.msra.mxu1 %v1451_v10 }
 0x217   :  { %1436 = vmatpush1.bf16.msra.mxu0 %v1435_v32  ;;  %1454 = vmatprep.subr.bf16.mxu1 %v1453_v50  ;;  %v998_v52 = vsel %vm938_vm7, %v1623_v28, %v1624_v58  ;;  %v999_v55 = vsel %vm938_vm7, %v1624_v58, %v1628_v1  ;;  %v997_v12 = vsel %vm938_vm7, %v2435_v5, %v1623_v28 }
 0x218   :  { %v1632_v30 = vpop.permute.xlu1 %1631 }
 0x219   :  { %v1634_v18 = vunpack.i.h.bf16 %v1632_v30  ;;  %v1633_v46 = vunpack.i.l.bf16 %v1632_v30 }
 0x21b   :  { %v1139_v3 = vsel %vm794_vm3, %v1633_v46, %v1634_v18  ;;  %v1140_v54 = vsel %vm794_vm3, %v1634_v18, %v1638_v11  ;;  %v1138_v27 = vsel %vm794_vm3, %v1129_v25, %v1633_v46 }
 0x21c   :  { %v1212_v29 = vpop.permute.xlu1 %1211  ;;  %v1437_v60 = vpack.c.bf16 %v1139_v3, %v998_v52  ;;  %v1455_v42 = vpack.c.bf16 %v1140_v54, %v999_v55  ;;  %v1439_v40 = vpack.c.bf16 %v1138_v27, %v997_v12 }
 0x21d   :  { %v1218_v43 = vsel %vm650_vm2, %v1212_v29, %v1214_v6  ;;  %v1217_v5 = vsel %vm650_vm2, %v1210_v48, %v1212_v29 }
 0x21e   :  { %1438 = vmatprep.subr.bf16.mxu0 %v1437_v60  ;;  %1456 = vmatpush1.bf16.msra.mxu1 %v1455_v42 }
 0x21f   :  { %1440 = vmatpush1.bf16.msra.mxu0 %v1439_v40  ;;  %1355 = vmatprep.subr.mxu1 %v1218_v43 }
 0x220   :  { %v1206_v15 = vpop.permute.xlu1 %1205  ;;  %1284 = vmatprep.subr.mxu0 %v1216_v2 }
 0x221   :  { %v1215_v38 = vsel %vm650_vm2, %v1206_v15, %v2429_v44 }
 0x222   :  { %1356 = vmatpush1.msra.mxu1 %v1217_v5 }
 0x223   :  { %1285 = vmatpush1.msra.mxu0 %v1215_v38  ;;  %1422 = vmatmul.mubr.msk.f32.vlgmr.msra.gmra.mrb[0].mxu1 %vm1264_vm1, %v1227_v57 }
 0x224   :  { %1421 = vmatmul.mubr.msk.f32.vlgmr.msra.gmra.mrb[0].mxu0 %vm1264_vm1, %v1227_v57 }
 0x2f6   :  { %v1405_v62 = vpop.f32.mrb[0].mxu1 }
 0x2f7   :  { %1423 = vst [vmem:[%s2515_s3 + $0x10] sm:$0x1f] %v1405_v62  ;;  %v1334_v34 = vpop.f32.mrb[0].mxu0  ;;  %v1407_v39 = vpop.f32.mrb[1].mxu1 }
 0x2f8   :  { %1410 = vst [vmem:[%s2515_s3] sm:$0x1f] %v1334_v34  ;;  %1424 = vst [vmem:[%s2515_s3 + $0x18] sm:$0x1f] %v1407_v39  ;;  %v1336_v44 = vpop.f32.mrb[1].mxu0 }
 0x2f9   :  { %1411 = vst [vmem:[%s2515_s3 + $0x8] sm:$0x1f] %v1336_v44 }
 0x2fa   :  { %1419 = vsyncpa [#allocation5], 1 }
 0x2fb   :  { %1420 = vsyncpa [#allocation7], 1 }

</bundles_post_ra>
